<compile_context>
chip_gen: v7x
topology: tpu7x:2x2x1
jax: 0.10.0
libtpu: 0.0.40
codegen_flags: <defaults>
</compile_context>

<pallas_src>
import jax
import jax.numpy as jnp
from jax.experimental import pallas as pl
from jax.experimental.pallas import tpu as pltpu


# ----------------------------------------------------------------------------
# Fused Pallas kernel:  GCN stack -> dilated TCN stack -> fusion -> both heads
# ----------------------------------------------------------------------------
def make_stgcn_kernel(T, N, F, H, K, dilations, num_gcn, num_tcn):
    H2 = 2 * H
    f32 = jnp.float32

    def kernel(*refs):
        it = iter(refs)
        x_ref = next(it)                       # (1, T, N, F)
        adj_ref = next(it)                     # (N, N)
        gcn_params = [(next(it), next(it)) for _ in range(num_gcn)]
        tcn_params = [(next(it), next(it)) for _ in range(num_tcn)]
        fus_ws_ref = next(it)                  # (H, 2H)   top half of fusion_w
        fus_wt_ref = next(it)                  # (H, 2H)   bottom half
        fus_b_ref = next(it)                   # (1, 2H)
        bn_scale_ref = next(it)                # (N, 1)
        bn_shift_ref = next(it)                # (N, 1)
        pw1_ref = next(it)                     # (2H, H)
        pb1_ref = next(it)                     # (1, H)
        pw2_ref = next(it)                     # (H, F)
        pb2_ref = next(it)                     # (1, F)
        rw1_ref = next(it)                     # (2H, 2H)
        rb1_ref = next(it)                     # (1, 2H)
        rw2_ref = next(it)                     # (2H, F)
        rb2_ref = next(it)                     # (1, F)
        pred_ref = next(it)                    # (1, N, F)    output
        recon_ref = next(it)                   # (1, T, N, F) output
        acc_ref = next(it)                     # (T, N, H)    f32 VMEM scratch

        # ---- spatial GCN stack: all T time steps batched as one 3-D matmul --
        adj_b = jnp.broadcast_to(adj_ref[...][None], (T, N, N))  # hoisted once
        h3 = x_ref[0]                                            # (T, N, F)
        for w_ref, b_ref in gcn_params:
            fin, fout = w_ref.shape
            if fin <= fout:   # (A @ X) @ W is cheaper when Fin <= Fout
                ax = jnp.einsum('tnm,tmc->tnc', adj_b, h3,
                                preferred_element_type=f32)
                hw = jnp.dot(ax.reshape(T * N, fin), w_ref[...],
                             preferred_element_type=f32)
            else:             # A @ (X @ W) is cheaper when Fin > Fout
                xw = jnp.dot(h3.reshape(T * N, fin), w_ref[...],
                             preferred_element_type=f32).reshape(T, N, fout)
                hw = jnp.einsum('tnm,tmc->tnc', adj_b, xw,
                                preferred_element_type=f32).reshape(T * N, fout)
            h3 = jnp.maximum(hw + b_ref[...], 0.0).reshape(T, N, fout)
        spatial3 = h3                                            # (T, N, H)

        # ---- temporal causal dilated TCN stack (no zero-pad copies) ---------
        t3 = spatial3
        for li, (w_ref, b_ref) in enumerate(tcn_params):
            d = dilations[li]                  # static Python int (2**li)
            acc_ref[...] = jnp.broadcast_to(b_ref[...].reshape(1, 1, H),
                                            (T, N, H))
            for j in range(K):                 # static unroll over taps
                s = j * d                      # causal shift of this tap
                if s >= T:
                    continue
                wk = w_ref[K - 1 - j]          # (H, H)
                contrib = jnp.dot(t3[:T - s].reshape((T - s) * N, H), wk,
                                  preferred_element_type=f32
                                  ).reshape(T - s, N, H)
                acc_ref[pl.ds(s, T - s)] += contrib
            t3 = jnp.maximum(acc_ref[...], 0.0)
        temporal3 = t3                                           # (T, N, H)

        # ---- fusion: [s | t] @ Wf + bf  ==  s @ Wf_top + t @ Wf_bot ---------
        lin = (jnp.dot(spatial3.reshape(T * N, H), fus_ws_ref[...],
                       preferred_element_type=f32)
               + jnp.dot(temporal3.reshape(T * N, H), fus_wt_ref[...],
                         preferred_element_type=f32)
               + fus_b_ref[...])                                 # (T*N, 2H)
        scale = bn_scale_ref[...].reshape(1, N, 1)
        shift = bn_shift_ref[...].reshape(1, N, 1)
        fused3 = jnp.maximum(lin.reshape(T, N, H2) * scale + shift, 0.0)

        # ---- prediction head (last time step): Linear->ReLU->(Dropout)->Linear
        p_h = jnp.maximum(
            jnp.dot(fused3[T - 1], pw1_ref[...], preferred_element_type=f32)
            + pb1_ref[...], 0.0)
        pred_ref[0] = (jnp.dot(p_h, pw2_ref[...], preferred_element_type=f32)
                       + pb2_ref[...])

        # ---- reconstruction head (all time steps): Linear->ReLU->Linear -----
        r_h = jnp.maximum(
            jnp.dot(fused3.reshape(T * N, H2), rw1_ref[...],
                    preferred_element_type=f32) + rb1_ref[...], 0.0)
        recon = (jnp.dot(r_h, rw2_ref[...], preferred_element_type=f32)
                 + rb2_ref[...])
        recon_ref[0] = recon.reshape(T, N, F)

    return kernel


# ----------------------------------------------------------------------------
# Wrapper
# ----------------------------------------------------------------------------
def normalize_adj(adj):
    n = adj.shape[0]
    a_hat = adj + jnp.eye(n, dtype=adj.dtype)
    d = jnp.sum(a_hat, axis=-1)
    d_inv_sqrt = 1.0 / jnp.sqrt(jnp.maximum(d, 1e-12))
    return a_hat * d_inv_sqrt[:, None] * d_inv_sqrt[None, :]


def _full_spec(arr):
    zeros = (0,) * arr.ndim

    def idx(b):
        return zeros

    return pl.BlockSpec(arr.shape, idx)


def stgcn_forward_impl(x, adj, params):
    B, T, N, Fdim = x.shape
    num_gcn = len(params["gcn"])
    num_tcn = len(params["tcn"])
    H = params["gcn"][0][0].shape[1]
    K = params["tcn"][0][0].shape[0]
    H2 = 2 * H
    dilations = tuple(2 ** i for i in range(num_tcn))   # static (matches spec)

    adj_norm = normalize_adj(adj)

    # eval-mode BatchNorm1d(num_nodes) folded to per-node scale/shift columns
    eps = 1e-5
    inv_std = params["bn_gamma"] / jnp.sqrt(params["bn_var"] + eps)       # (N,)
    bn_scale = inv_std.reshape(N, 1)
    bn_shift = (params["bn_beta"] - params["bn_mean"] * inv_std).reshape(N, 1)

    # split the fusion weight so the kernel avoids a lane-axis concat
    fus_ws = params["fusion_w"][:H]                                   # (H, 2H)
    fus_wt = params["fusion_w"][H:]                                   # (H, 2H)

    args = [x, adj_norm]
    in_specs = [
        pl.BlockSpec((1, T, N, Fdim), lambda b: (b, 0, 0, 0)),
        _full_spec(adj_norm),
    ]

    def add(arr):
        args.append(arr)
        in_specs.append(_full_spec(arr))

    for w, b in params["gcn"]:
        add(w); add(b.reshape(1, -1))
    for w, b in params["tcn"]:
        add(w); add(b.reshape(1, -1))
    add(fus_ws); add(fus_wt); add(params["fusion_b"].reshape(1, H2))
    add(bn_scale); add(bn_shift)
    add(params["pred_w1"]); add(params["pred_b1"].reshape(1, -1))
    add(params["pred_w2"]); add(params["pred_b2"].reshape(1, -1))
    add(params["recon_w1"]); add(params["recon_b1"].reshape(1, -1))
    add(params["recon_w2"]); add(params["recon_b2"].reshape(1, -1))

    kernel = make_stgcn_kernel(T, N, Fdim, H, K, dilations, num_gcn, num_tcn)

    pred, recon = pl.pallas_call(
        kernel,
        out_shape=(jax.ShapeDtypeStruct((B, N, Fdim), jnp.float32),
                   jax.ShapeDtypeStruct((B, T, N, Fdim), jnp.float32)),
        grid_spec=pltpu.PrefetchScalarGridSpec(
            num_scalar_prefetch=0, grid=(B,),
            in_specs=in_specs,
            out_specs=[pl.BlockSpec((1, N, Fdim), lambda b: (b, 0, 0)),
                       pl.BlockSpec((1, T, N, Fdim), lambda b: (b, 0, 0, 0))],
            scratch_shapes=[pltpu.VMEM((T, N, H), jnp.float32)]),
        compiler_params=pltpu.CompilerParams(
            dimension_semantics=("parallel",)),
    )(*args)
    return pred, recon


stgcn_forward = jax.jit(stgcn_forward_impl)


# ----------------------------------------------------------------------------
# Parameters
# ----------------------------------------------------------------------------
def _uniform(key, shape, fan_in):
    bound = 1.0 / jnp.sqrt(jnp.asarray(float(fan_in)))
    return jax.random.uniform(key, shape, jnp.float32, -bound, bound)


def init_params(key, node_features, hidden_dim, num_nodes,
                num_gcn_layers=2, num_tcn_layers=2, tcn_ksize=3):
    F, H, N = node_features, hidden_dim, num_nodes
    keys = iter(jax.random.split(key, 32))
    p = {}
    p["gcn"] = []
    for i in range(num_gcn_layers):
        fin = F if i == 0 else H
        p["gcn"].append((_uniform(next(keys), (fin, H), fin),
                         _uniform(next(keys), (H,), fin)))
    p["tcn"] = []
    for i in range(num_tcn_layers):
        p["tcn"].append((_uniform(next(keys), (tcn_ksize, H, H), H * tcn_ksize),
                         _uniform(next(keys), (H,), H * tcn_ksize)))
    H2 = 2 * H
    p["fusion_w"] = _uniform(next(keys), (H2, H2), H2)
    p["fusion_b"] = _uniform(next(keys), (H2,), H2)
    # BatchNorm1d(num_nodes) buffers, eval-mode defaults
    p["bn_gamma"] = jnp.ones((N,), jnp.float32)
    p["bn_beta"] = jnp.zeros((N,), jnp.float32)
    p["bn_mean"] = jnp.zeros((N,), jnp.float32)
    p["bn_var"] = jnp.ones((N,), jnp.float32)
    p["pred_w1"] = _uniform(next(keys), (H2, H), H2)
    p["pred_b1"] = _uniform(next(keys), (H,), H2)
    p["pred_w2"] = _uniform(next(keys), (H, F), H)
    p["pred_b2"] = _uniform(next(keys), (F,), H)
    p["recon_w1"] = _uniform(next(keys), (H2, H2), H2)
    p["recon_b1"] = _uniform(next(keys), (H2,), H2)
    p["recon_w2"] = _uniform(next(keys), (H2, F), H2)
    p["recon_b2"] = _uniform(next(keys), (F,), H2)
    return p


# ----------------------------------------------------------------------------
# Pure-JAX reference (same assumed semantics) for validation
# ----------------------------------------------------------------------------
def stgcn_reference(x, adj, params):
    B, T, N, Fdim = x.shape
    H = params["gcn"][0][0].shape[1]
    K = params["tcn"][0][0].shape[0]
    a = normalize_adj(adj)
    h = x
    for w, b in params["gcn"]:
        h = jax.nn.relu(jnp.einsum('nm,btmf->btnf', a, h) @ w + b)
    spatial = h                                                   # (B,T,N,H)
    t = spatial
    for li, (w, b) in enumerate(params["tcn"]):
        d = 2 ** li
        acc = jnp.zeros((B, T, N, H), jnp.float32) + b
        for j in range(K):
            s = j * d
            if s >= T:
                continue
            xs = jnp.pad(t[:, :T - s], ((0, 0), (s, 0), (0, 0), (0, 0)))
            acc = acc + xs @ w[K - 1 - j]
        t = jax.nn.relu(acc)
    temporal = t
    fused = (jnp.concatenate([spatial, temporal], axis=-1)
             @ params["fusion_w"] + params["fusion_b"])
    eps = 1e-5
    inv_std = params["bn_gamma"] / jnp.sqrt(params["bn_var"] + eps)
    shift = params["bn_beta"] - params["bn_mean"] * inv_std
    fused = fused * inv_std[None, None, :, None] + shift[None, None, :, None]
    fused = jax.nn.relu(fused)
    p = jax.nn.relu(fused[:, -1] @ params["pred_w1"] + params["pred_b1"])
    prediction = p @ params["pred_w2"] + params["pred_b2"]
    r = jax.nn.relu(fused @ params["recon_w1"] + params["recon_b1"])
    reconstruction = r @ params["recon_w2"] + params["recon_b2"]
    return prediction, reconstruction


# ----------------------------------------------------------------------------
if __name__ == "__main__":
    B, T, N, F, H = 2, 8, 16, 4, 32

    key = jax.random.PRNGKey(0)
    k_x, k_adj, k_p = jax.random.split(key, 3)

    x = jax.random.normal(k_x, (B, T, N, F), jnp.float32)

    # deterministic symmetric adjacency (no self loops; added in normalize_adj)
    a = (jax.random.uniform(k_adj, (N, N)) < 0.3).astype(jnp.float32)
    adj = jnp.clip(a + a.T, 0.0, 1.0) * (1.0 - jnp.eye(N, dtype=jnp.float32))

    params = init_params(k_p, node_features=F, hidden_dim=H, num_nodes=N)

    pred, recon = stgcn_forward(x, adj, params)
    jax.block_until_ready((pred, recon))

    assert pred.shape == (B, N, F), pred.shape
    assert recon.shape == (B, T, N, F), recon.shape
    assert bool(jnp.all(jnp.isfinite(pred))) and bool(jnp.all(jnp.isfinite(recon)))

    # validate against the pure-JAX reference of the same (assumed) semantics
    pred_ref, recon_ref = stgcn_reference(x, adj, params)
    assert float(jnp.max(jnp.abs(pred - pred_ref))) < 1e-3
    assert float(jnp.max(jnp.abs(recon - recon_ref))) < 1e-3

    print("KERNEL_OK")
</pallas_src>

<mosaic_0001>
module attributes {stable_mosaic.version = 11 : i64} {
  func.func @kernel(%arg0: i32, %arg1: memref<1x8x16x4xf32, #tpu.memory_space<vmem>>, %arg2: memref<16x16xf32, #tpu.memory_space<vmem>>, %arg3: memref<4x32xf32, #tpu.memory_space<vmem>>, %arg4: memref<1x32xf32, #tpu.memory_space<vmem>>, %arg5: memref<32x32xf32, #tpu.memory_space<vmem>>, %arg6: memref<1x32xf32, #tpu.memory_space<vmem>>, %arg7: memref<3x32x32xf32, #tpu.memory_space<vmem>>, %arg8: memref<1x32xf32, #tpu.memory_space<vmem>>, %arg9: memref<3x32x32xf32, #tpu.memory_space<vmem>>, %arg10: memref<1x32xf32, #tpu.memory_space<vmem>>, %arg11: memref<32x64xf32, #tpu.memory_space<vmem>>, %arg12: memref<32x64xf32, #tpu.memory_space<vmem>>, %arg13: memref<1x64xf32, #tpu.memory_space<vmem>>, %arg14: memref<16x1xf32, #tpu.memory_space<vmem>>, %arg15: memref<16x1xf32, #tpu.memory_space<vmem>>, %arg16: memref<64x32xf32, #tpu.memory_space<vmem>>, %arg17: memref<1x32xf32, #tpu.memory_space<vmem>>, %arg18: memref<32x4xf32, #tpu.memory_space<vmem>>, %arg19: memref<1x4xf32, #tpu.memory_space<vmem>>, %arg20: memref<64x64xf32, #tpu.memory_space<vmem>>, %arg21: memref<1x64xf32, #tpu.memory_space<vmem>>, %arg22: memref<64x4xf32, #tpu.memory_space<vmem>>, %arg23: memref<1x4xf32, #tpu.memory_space<vmem>>, %arg24: memref<1x16x4xf32, #tpu.memory_space<vmem>>, %arg25: memref<1x8x16x4xf32, #tpu.memory_space<vmem>>, %arg26: memref<8x16x32xf32, #tpu.memory_space<vmem>>) attributes {dimension_semantics = [#tpu.dimension_semantics<parallel>], iteration_bounds = array<i64: 2>, scalar_prefetch = 0 : i64, scratch_operands = 1 : i64, tpu.core_type = #tpu.core_type<tc>, window_params = [{transform_indices = @transform_0, window_bounds = array<i64: 1, 8, 16, 4>}, {pipeline_mode = #tpu.pipeline_mode<synchronous>, transform_indices = @transform_1, window_bounds = array<i64: 16, 16>}, {pipeline_mode = #tpu.pipeline_mode<synchronous>, transform_indices = @transform_2, window_bounds = array<i64: 4, 32>}, {pipeline_mode = #tpu.pipeline_mode<synchronous>, transform_indices = @transform_3, window_bounds = array<i64: 1, 32>}, {pipeline_mode = #tpu.pipeline_mode<synchronous>, transform_indices = @transform_4, window_bounds = array<i64: 32, 32>}, {pipeline_mode = #tpu.pipeline_mode<synchronous>, transform_indices = @transform_5, window_bounds = array<i64: 1, 32>}, {pipeline_mode = #tpu.pipeline_mode<synchronous>, transform_indices = @transform_6, window_bounds = array<i64: 3, 32, 32>}, {pipeline_mode = #tpu.pipeline_mode<synchronous>, transform_indices = @transform_7, window_bounds = array<i64: 1, 32>}, {pipeline_mode = #tpu.pipeline_mode<synchronous>, transform_indices = @transform_8, window_bounds = array<i64: 3, 32, 32>}, {pipeline_mode = #tpu.pipeline_mode<synchronous>, transform_indices = @transform_9, window_bounds = array<i64: 1, 32>}, {pipeline_mode = #tpu.pipeline_mode<synchronous>, transform_indices = @transform_10, window_bounds = array<i64: 32, 64>}, {pipeline_mode = #tpu.pipeline_mode<synchronous>, transform_indices = @transform_11, window_bounds = array<i64: 32, 64>}, {pipeline_mode = #tpu.pipeline_mode<synchronous>, transform_indices = @transform_12, window_bounds = array<i64: 1, 64>}, {pipeline_mode = #tpu.pipeline_mode<synchronous>, transform_indices = @transform_13, window_bounds = array<i64: 16, 1>}, {pipeline_mode = #tpu.pipeline_mode<synchronous>, transform_indices = @transform_14, window_bounds = array<i64: 16, 1>}, {pipeline_mode = #tpu.pipeline_mode<synchronous>, transform_indices = @transform_15, window_bounds = array<i64: 64, 32>}, {pipeline_mode = #tpu.pipeline_mode<synchronous>, transform_indices = @transform_16, window_bounds = array<i64: 1, 32>}, {pipeline_mode = #tpu.pipeline_mode<synchronous>, transform_indices = @transform_17, window_bounds = array<i64: 32, 4>}, {pipeline_mode = #tpu.pipeline_mode<synchronous>, transform_indices = @transform_18, window_bounds = array<i64: 1, 4>}, {pipeline_mode = #tpu.pipeline_mode<synchronous>, transform_indices = @transform_19, window_bounds = array<i64: 64, 64>}, {pipeline_mode = #tpu.pipeline_mode<synchronous>, transform_indices = @transform_20, window_bounds = array<i64: 1, 64>}, {pipeline_mode = #tpu.pipeline_mode<synchronous>, transform_indices = @transform_21, window_bounds = array<i64: 64, 4>}, {pipeline_mode = #tpu.pipeline_mode<synchronous>, transform_indices = @transform_22, window_bounds = array<i64: 1, 4>}, {transform_indices = @transform_23, window_bounds = array<i64: 1, 16, 4>}, {transform_indices = @transform_24, window_bounds = array<i64: 1, 8, 16, 4>}]} {
    %c0 = arith.constant 0 : index
    %c0_0 = arith.constant 0 : index
    %0 = vector.load %arg2[%c0, %c0_0] : memref<16x16xf32, #tpu.memory_space<vmem>>, vector<16x16xf32>
    %1 = vector.shape_cast %0 : vector<16x16xf32> to vector<1x16x16xf32>
    %2 = vector.shape_cast %1 : vector<1x16x16xf32> to vector<1x16x16xf32>
    %3 = vector.broadcast %2 : vector<1x16x16xf32> to vector<8x16x16xf32>
    %c0_1 = arith.constant 0 : index
    %c0_2 = arith.constant 0 : index
    %c0_3 = arith.constant 0 : index
    %c0_4 = arith.constant 0 : index
    %4 = vector.load %arg1[%c0_1, %c0_2, %c0_3, %c0_4] : memref<1x8x16x4xf32, #tpu.memory_space<vmem>>, vector<1x8x16x4xf32>
    %5 = vector.shape_cast %4 : vector<1x8x16x4xf32> to vector<8x16x4xf32>
    "tpu.trace_start"() <{level = 10 : i32, message = "tnm,tmc->tnc"}> : () -> ()
    %cst = arith.constant dense<0.000000e+00> : vector<8x16x4xf32>
    %6 = tpu.matmul %3, %5, %cst {dimension_numbers = #tpu.dot_dimension_numbers<[2], [1], [1], [2], [0, 0, 0, 1, 1, 2], [0], [0]>} : vector<8x16x16xf32>, vector<8x16x4xf32>, vector<8x16x4xf32> -> vector<8x16x4xf32>
    "tpu.trace_stop"() : () -> ()
    %7 = vector.shape_cast %6 : vector<8x16x4xf32> to vector<128x4xf32>
    %c0_5 = arith.constant 0 : index
    %c0_6 = arith.constant 0 : index
    %8 = vector.load %arg3[%c0_5, %c0_6] : memref<4x32xf32, #tpu.memory_space<vmem>>, vector<4x32xf32>
    %cst_7 = arith.constant dense<0.000000e+00> : vector<128x32xf32>
    %9 = tpu.matmul %7, %8, %cst_7 {dimension_numbers = #tpu.dot_dimension_numbers<[1], [0], [0], [1], [0, 0, 1, 1], [], []>} : vector<128x4xf32>, vector<4x32xf32>, vector<128x32xf32> -> vector<128x32xf32>
    %c0_8 = arith.constant 0 : index
    %c0_9 = arith.constant 0 : index
    %10 = vector.load %arg4[%c0_8, %c0_9] : memref<1x32xf32, #tpu.memory_space<vmem>>, vector<1x32xf32>
    %11 = vector.broadcast %10 : vector<1x32xf32> to vector<128x32xf32>
    %12 = arith.addf %9, %11 : vector<128x32xf32>
    %cst_10 = arith.constant 0.000000e+00 : f32
    %13 = vector.broadcast %cst_10 : f32 to vector<128x32xf32>
    %14 = arith.maximumf %12, %13 : vector<128x32xf32>
    %15 = vector.shape_cast %14 : vector<128x32xf32> to vector<8x16x32xf32>
    "tpu.trace_start"() <{level = 10 : i32, message = "tnm,tmc->tnc"}> : () -> ()
    %cst_11 = arith.constant dense<0.000000e+00> : vector<8x16x32xf32>
    %16 = tpu.matmul %3, %15, %cst_11 {dimension_numbers = #tpu.dot_dimension_numbers<[2], [1], [1], [2], [0, 0, 0, 1, 1, 2], [0], [0]>} : vector<8x16x16xf32>, vector<8x16x32xf32>, vector<8x16x32xf32> -> vector<8x16x32xf32>
    "tpu.trace_stop"() : () -> ()
    %17 = vector.shape_cast %16 : vector<8x16x32xf32> to vector<128x32xf32>
    %c0_12 = arith.constant 0 : index
    %c0_13 = arith.constant 0 : index
    %18 = vector.load %arg5[%c0_12, %c0_13] : memref<32x32xf32, #tpu.memory_space<vmem>>, vector<32x32xf32>
    %cst_14 = arith.constant dense<0.000000e+00> : vector<128x32xf32>
    %19 = tpu.matmul %17, %18, %cst_14 {dimension_numbers = #tpu.dot_dimension_numbers<[1], [0], [0], [1], [0, 0, 1, 1], [], []>} : vector<128x32xf32>, vector<32x32xf32>, vector<128x32xf32> -> vector<128x32xf32>
    %c0_15 = arith.constant 0 : index
    %c0_16 = arith.constant 0 : index
    %20 = vector.load %arg6[%c0_15, %c0_16] : memref<1x32xf32, #tpu.memory_space<vmem>>, vector<1x32xf32>
    %21 = vector.broadcast %20 : vector<1x32xf32> to vector<128x32xf32>
    %22 = arith.addf %19, %21 : vector<128x32xf32>
    %cst_17 = arith.constant 0.000000e+00 : f32
    %23 = vector.broadcast %cst_17 : f32 to vector<128x32xf32>
    %24 = arith.maximumf %22, %23 : vector<128x32xf32>
    %25 = vector.shape_cast %24 : vector<128x32xf32> to vector<8x16x32xf32>
    %c0_18 = arith.constant 0 : index
    %c0_19 = arith.constant 0 : index
    %26 = vector.load %arg8[%c0_18, %c0_19] : memref<1x32xf32, #tpu.memory_space<vmem>>, vector<1x32xf32>
    %27 = vector.shape_cast %26 : vector<1x32xf32> to vector<1x1x32xf32>
    %28 = vector.shape_cast %27 : vector<1x1x32xf32> to vector<1x1x32xf32>
    %29 = vector.broadcast %28 : vector<1x1x32xf32> to vector<8x16x32xf32>
    %c0_20 = arith.constant 0 : index
    %c0_21 = arith.constant 0 : index
    %c0_22 = arith.constant 0 : index
    %30 = vector.load %arg26[%c0_20, %c0_21, %c0_22] : memref<8x16x32xf32, #tpu.memory_space<vmem>>, vector<8x16x32xf32>
    tpu.vector_store %arg26[%c0_20, %c0_21, %c0_22], %29 {strides = array<i32>} : memref<8x16x32xf32, #tpu.memory_space<vmem>>, vector<8x16x32xf32>,
    %c2 = arith.constant 2 : index
    %c0_23 = arith.constant 0 : index
    %c0_24 = arith.constant 0 : index
    %31 = vector.load %arg7[%c2, %c0_23, %c0_24] : memref<3x32x32xf32, #tpu.memory_space<vmem>>, vector<1x32x32xf32>
    %32 = vector.shape_cast %31 : vector<1x32x32xf32> to vector<32x32xf32>
    %33 = vector.shape_cast %25 : vector<8x16x32xf32> to vector<128x32xf32>
    %cst_25 = arith.constant dense<0.000000e+00> : vector<128x32xf32>
    %34 = tpu.matmul %33, %32, %cst_25 {dimension_numbers = #tpu.dot_dimension_numbers<[1], [0], [0], [1], [0, 0, 1, 1], [], []>} : vector<128x32xf32>, vector<32x32xf32>, vector<128x32xf32> -> vector<128x32xf32>
    %35 = vector.shape_cast %34 : vector<128x32xf32> to vector<8x16x32xf32>
    %c0_26 = arith.constant 0 : index
    %c0_27 = arith.constant 0 : index
    %c0_28 = arith.constant 0 : index
    %36 = vector.load %arg26[%c0_26, %c0_27, %c0_28] : memref<8x16x32xf32, #tpu.memory_space<vmem>>, vector<8x16x32xf32>
    %37 = arith.addf %36, %35 : vector<8x16x32xf32>
    %c0_29 = arith.constant 0 : index
    %c0_30 = arith.constant 0 : index
    %c0_31 = arith.constant 0 : index
    %38 = vector.load %arg26[%c0_29, %c0_30, %c0_31] : memref<8x16x32xf32, #tpu.memory_space<vmem>>, vector<8x16x32xf32>
    tpu.vector_store %arg26[%c0_29, %c0_30, %c0_31], %37 {strides = array<i32>} : memref<8x16x32xf32, #tpu.memory_space<vmem>>, vector<8x16x32xf32>,
    %c1 = arith.constant 1 : index
    %c0_32 = arith.constant 0 : index
    %c0_33 = arith.constant 0 : index
    %39 = vector.load %arg7[%c1, %c0_32, %c0_33] : memref<3x32x32xf32, #tpu.memory_space<vmem>>, vector<1x32x32xf32>
    %40 = vector.shape_cast %39 : vector<1x32x32xf32> to vector<32x32xf32>
    %41 = vector.extract_strided_slice %25 {offsets = [0, 0, 0], sizes = [7, 16, 32], strides = [1, 1, 1]} : vector<8x16x32xf32> to vector<7x16x32xf32>
    %42 = vector.shape_cast %41 : vector<7x16x32xf32> to vector<112x32xf32>
    %cst_34 = arith.constant dense<0.000000e+00> : vector<112x32xf32>
    %43 = tpu.matmul %42, %40, %cst_34 {dimension_numbers = #tpu.dot_dimension_numbers<[1], [0], [0], [1], [0, 0, 1, 1], [], []>} : vector<112x32xf32>, vector<32x32xf32>, vector<112x32xf32> -> vector<112x32xf32>
    %44 = vector.shape_cast %43 : vector<112x32xf32> to vector<7x16x32xf32>
    %c1_35 = arith.constant 1 : index
    %c0_36 = arith.constant 0 : index
    %c0_37 = arith.constant 0 : index
    %45 = vector.load %arg26[%c1_35, %c0_36, %c0_37] : memref<8x16x32xf32, #tpu.memory_space<vmem>>, vector<7x16x32xf32>
    %46 = arith.addf %45, %44 : vector<7x16x32xf32>
    %c1_38 = arith.constant 1 : index
    %c0_39 = arith.constant 0 : index
    %c0_40 = arith.constant 0 : index
    %47 = vector.load %arg26[%c1_38, %c0_39, %c0_40] : memref<8x16x32xf32, #tpu.memory_space<vmem>>, vector<7x16x32xf32>
    tpu.vector_store %arg26[%c1_38, %c0_39, %c0_40], %46 {strides = array<i32>} : memref<8x16x32xf32, #tpu.memory_space<vmem>>, vector<7x16x32xf32>,
    %c0_41 = arith.constant 0 : index
    %c0_42 = arith.constant 0 : index
    %c0_43 = arith.constant 0 : index
    %48 = vector.load %arg7[%c0_41, %c0_42, %c0_43] : memref<3x32x32xf32, #tpu.memory_space<vmem>>, vector<1x32x32xf32>
    %49 = vector.shape_cast %48 : vector<1x32x32xf32> to vector<32x32xf32>
    %50 = vector.extract_strided_slice %25 {offsets = [0, 0, 0], sizes = [6, 16, 32], strides = [1, 1, 1]} : vector<8x16x32xf32> to vector<6x16x32xf32>
    %51 = vector.shape_cast %50 : vector<6x16x32xf32> to vector<96x32xf32>
    %cst_44 = arith.constant dense<0.000000e+00> : vector<96x32xf32>
    %52 = tpu.matmul %51, %49, %cst_44 {dimension_numbers = #tpu.dot_dimension_numbers<[1], [0], [0], [1], [0, 0, 1, 1], [], []>} : vector<96x32xf32>, vector<32x32xf32>, vector<96x32xf32> -> vector<96x32xf32>
    %53 = vector.shape_cast %52 : vector<96x32xf32> to vector<6x16x32xf32>
    %c2_45 = arith.constant 2 : index
    %c0_46 = arith.constant 0 : index
    %c0_47 = arith.constant 0 : index
    %54 = vector.load %arg26[%c2_45, %c0_46, %c0_47] : memref<8x16x32xf32, #tpu.memory_space<vmem>>, vector<6x16x32xf32>
    %55 = arith.addf %54, %53 : vector<6x16x32xf32>
    %c2_48 = arith.constant 2 : index
    %c0_49 = arith.constant 0 : index
    %c0_50 = arith.constant 0 : index
    %56 = vector.load %arg26[%c2_48, %c0_49, %c0_50] : memref<8x16x32xf32, #tpu.memory_space<vmem>>, vector<6x16x32xf32>
    tpu.vector_store %arg26[%c2_48, %c0_49, %c0_50], %55 {strides = array<i32>} : memref<8x16x32xf32, #tpu.memory_space<vmem>>, vector<6x16x32xf32>,
    %c0_51 = arith.constant 0 : index
    %c0_52 = arith.constant 0 : index
    %c0_53 = arith.constant 0 : index
    %57 = vector.load %arg26[%c0_51, %c0_52, %c0_53] : memref<8x16x32xf32, #tpu.memory_space<vmem>>, vector<8x16x32xf32>
    %cst_54 = arith.constant 0.000000e+00 : f32
    %58 = vector.broadcast %cst_54 : f32 to vector<8x16x32xf32>
    %59 = arith.maximumf %57, %58 : vector<8x16x32xf32>
    %c0_55 = arith.constant 0 : index
    %c0_56 = arith.constant 0 : index
    %60 = vector.load %arg10[%c0_55, %c0_56] : memref<1x32xf32, #tpu.memory_space<vmem>>, vector<1x32xf32>
    %61 = vector.shape_cast %60 : vector<1x32xf32> to vector<1x1x32xf32>
    %62 = vector.shape_cast %61 : vector<1x1x32xf32> to vector<1x1x32xf32>
    %63 = vector.broadcast %62 : vector<1x1x32xf32> to vector<8x16x32xf32>
    %c0_57 = arith.constant 0 : index
    %c0_58 = arith.constant 0 : index
    %c0_59 = arith.constant 0 : index
    %64 = vector.load %arg26[%c0_57, %c0_58, %c0_59] : memref<8x16x32xf32, #tpu.memory_space<vmem>>, vector<8x16x32xf32>
    tpu.vector_store %arg26[%c0_57, %c0_58, %c0_59], %63 {strides = array<i32>} : memref<8x16x32xf32, #tpu.memory_space<vmem>>, vector<8x16x32xf32>,
    %c2_60 = arith.constant 2 : index
    %c0_61 = arith.constant 0 : index
    %c0_62 = arith.constant 0 : index
    %65 = vector.load %arg9[%c2_60, %c0_61, %c0_62] : memref<3x32x32xf32, #tpu.memory_space<vmem>>, vector<1x32x32xf32>
    %66 = vector.shape_cast %65 : vector<1x32x32xf32> to vector<32x32xf32>
    %67 = vector.shape_cast %59 : vector<8x16x32xf32> to vector<128x32xf32>
    %cst_63 = arith.constant dense<0.000000e+00> : vector<128x32xf32>
    %68 = tpu.matmul %67, %66, %cst_63 {dimension_numbers = #tpu.dot_dimension_numbers<[1], [0], [0], [1], [0, 0, 1, 1], [], []>} : vector<128x32xf32>, vector<32x32xf32>, vector<128x32xf32> -> vector<128x32xf32>
    %69 = vector.shape_cast %68 : vector<128x32xf32> to vector<8x16x32xf32>
    %c0_64 = arith.constant 0 : index
    %c0_65 = arith.constant 0 : index
    %c0_66 = arith.constant 0 : index
    %70 = vector.load %arg26[%c0_64, %c0_65, %c0_66] : memref<8x16x32xf32, #tpu.memory_space<vmem>>, vector<8x16x32xf32>
    %71 = arith.addf %70, %69 : vector<8x16x32xf32>
    %c0_67 = arith.constant 0 : index
    %c0_68 = arith.constant 0 : index
    %c0_69 = arith.constant 0 : index
    %72 = vector.load %arg26[%c0_67, %c0_68, %c0_69] : memref<8x16x32xf32, #tpu.memory_space<vmem>>, vector<8x16x32xf32>
    tpu.vector_store %arg26[%c0_67, %c0_68, %c0_69], %71 {strides = array<i32>} : memref<8x16x32xf32, #tpu.memory_space<vmem>>, vector<8x16x32xf32>,
    %c1_70 = arith.constant 1 : index
    %c0_71 = arith.constant 0 : index
    %c0_72 = arith.constant 0 : index
    %73 = vector.load %arg9[%c1_70, %c0_71, %c0_72] : memref<3x32x32xf32, #tpu.memory_space<vmem>>, vector<1x32x32xf32>
    %74 = vector.shape_cast %73 : vector<1x32x32xf32> to vector<32x32xf32>
    %75 = vector.extract_strided_slice %59 {offsets = [0, 0, 0], sizes = [6, 16, 32], strides = [1, 1, 1]} : vector<8x16x32xf32> to vector<6x16x32xf32>
    %76 = vector.shape_cast %75 : vector<6x16x32xf32> to vector<96x32xf32>
    %cst_73 = arith.constant dense<0.000000e+00> : vector<96x32xf32>
    %77 = tpu.matmul %76, %74, %cst_73 {dimension_numbers = #tpu.dot_dimension_numbers<[1], [0], [0], [1], [0, 0, 1, 1], [], []>} : vector<96x32xf32>, vector<32x32xf32>, vector<96x32xf32> -> vector<96x32xf32>
    %78 = vector.shape_cast %77 : vector<96x32xf32> to vector<6x16x32xf32>
    %c2_74 = arith.constant 2 : index
    %c0_75 = arith.constant 0 : index
    %c0_76 = arith.constant 0 : index
    %79 = vector.load %arg26[%c2_74, %c0_75, %c0_76] : memref<8x16x32xf32, #tpu.memory_space<vmem>>, vector<6x16x32xf32>
    %80 = arith.addf %79, %78 : vector<6x16x32xf32>
    %c2_77 = arith.constant 2 : index
    %c0_78 = arith.constant 0 : index
    %c0_79 = arith.constant 0 : index
    %81 = vector.load %arg26[%c2_77, %c0_78, %c0_79] : memref<8x16x32xf32, #tpu.memory_space<vmem>>, vector<6x16x32xf32>
    tpu.vector_store %arg26[%c2_77, %c0_78, %c0_79], %80 {strides = array<i32>} : memref<8x16x32xf32, #tpu.memory_space<vmem>>, vector<6x16x32xf32>,
    %c0_80 = arith.constant 0 : index
    %c0_81 = arith.constant 0 : index
    %c0_82 = arith.constant 0 : index
    %82 = vector.load %arg9[%c0_80, %c0_81, %c0_82] : memref<3x32x32xf32, #tpu.memory_space<vmem>>, vector<1x32x32xf32>
    %83 = vector.shape_cast %82 : vector<1x32x32xf32> to vector<32x32xf32>
    %84 = vector.extract_strided_slice %59 {offsets = [0, 0, 0], sizes = [4, 16, 32], strides = [1, 1, 1]} : vector<8x16x32xf32> to vector<4x16x32xf32>
    %85 = vector.shape_cast %84 : vector<4x16x32xf32> to vector<64x32xf32>
    %cst_83 = arith.constant dense<0.000000e+00> : vector<64x32xf32>
    %86 = tpu.matmul %85, %83, %cst_83 {dimension_numbers = #tpu.dot_dimension_numbers<[1], [0], [0], [1], [0, 0, 1, 1], [], []>} : vector<64x32xf32>, vector<32x32xf32>, vector<64x32xf32> -> vector<64x32xf32>
    %87 = vector.shape_cast %86 : vector<64x32xf32> to vector<4x16x32xf32>
    %c4 = arith.constant 4 : index
    %c0_84 = arith.constant 0 : index
    %c0_85 = arith.constant 0 : index
    %88 = vector.load %arg26[%c4, %c0_84, %c0_85] : memref<8x16x32xf32, #tpu.memory_space<vmem>>, vector<4x16x32xf32>
    %89 = arith.addf %88, %87 : vector<4x16x32xf32>
    %c4_86 = arith.constant 4 : index
    %c0_87 = arith.constant 0 : index
    %c0_88 = arith.constant 0 : index
    %90 = vector.load %arg26[%c4_86, %c0_87, %c0_88] : memref<8x16x32xf32, #tpu.memory_space<vmem>>, vector<4x16x32xf32>
    tpu.vector_store %arg26[%c4_86, %c0_87, %c0_88], %89 {strides = array<i32>} : memref<8x16x32xf32, #tpu.memory_space<vmem>>, vector<4x16x32xf32>,
    %c0_89 = arith.constant 0 : index
    %c0_90 = arith.constant 0 : index
    %c0_91 = arith.constant 0 : index
    %91 = vector.load %arg26[%c0_89, %c0_90, %c0_91] : memref<8x16x32xf32, #tpu.memory_space<vmem>>, vector<8x16x32xf32>
    %cst_92 = arith.constant 0.000000e+00 : f32
    %92 = vector.broadcast %cst_92 : f32 to vector<8x16x32xf32>
    %93 = arith.maximumf %91, %92 : vector<8x16x32xf32>
    %94 = vector.shape_cast %25 : vector<8x16x32xf32> to vector<128x32xf32>
    %c0_93 = arith.constant 0 : index
    %c0_94 = arith.constant 0 : index
    %95 = vector.load %arg11[%c0_93, %c0_94] : memref<32x64xf32, #tpu.memory_space<vmem>>, vector<32x64xf32>
    %cst_95 = arith.constant dense<0.000000e+00> : vector<128x64xf32>
    %96 = tpu.matmul %94, %95, %cst_95 {dimension_numbers = #tpu.dot_dimension_numbers<[1], [0], [0], [1], [0, 0, 1, 1], [], []>} : vector<128x32xf32>, vector<32x64xf32>, vector<128x64xf32> -> vector<128x64xf32>
    %97 = vector.shape_cast %93 : vector<8x16x32xf32> to vector<128x32xf32>
    %c0_96 = arith.constant 0 : index
    %c0_97 = arith.constant 0 : index
    %98 = vector.load %arg12[%c0_96, %c0_97] : memref<32x64xf32, #tpu.memory_space<vmem>>, vector<32x64xf32>
    %cst_98 = arith.constant dense<0.000000e+00> : vector<128x64xf32>
    %99 = tpu.matmul %97, %98, %cst_98 {dimension_numbers = #tpu.dot_dimension_numbers<[1], [0], [0], [1], [0, 0, 1, 1], [], []>} : vector<128x32xf32>, vector<32x64xf32>, vector<128x64xf32> -> vector<128x64xf32>
    %100 = arith.addf %96, %99 : vector<128x64xf32>
    %c0_99 = arith.constant 0 : index
    %c0_100 = arith.constant 0 : index
    %101 = vector.load %arg13[%c0_99, %c0_100] : memref<1x64xf32, #tpu.memory_space<vmem>>, vector<1x64xf32>
    %102 = vector.broadcast %101 : vector<1x64xf32> to vector<128x64xf32>
    %103 = arith.addf %100, %102 : vector<128x64xf32>
    %c0_101 = arith.constant 0 : index
    %c0_102 = arith.constant 0 : index
    %104 = vector.load %arg14[%c0_101, %c0_102] : memref<16x1xf32, #tpu.memory_space<vmem>>, vector<16x1xf32>
    %105 = vector.shape_cast %104 : vector<16x1xf32> to vector<1x16x1xf32>
    %c0_103 = arith.constant 0 : index
    %c0_104 = arith.constant 0 : index
    %106 = vector.load %arg15[%c0_103, %c0_104] : memref<16x1xf32, #tpu.memory_space<vmem>>, vector<16x1xf32>
    %107 = vector.shape_cast %106 : vector<16x1xf32> to vector<1x16x1xf32>
    %108 = vector.shape_cast %103 : vector<128x64xf32> to vector<8x16x64xf32>
    %109 = vector.broadcast %105 : vector<1x16x1xf32> to vector<8x16x64xf32>
    %110 = arith.mulf %108, %109 : vector<8x16x64xf32>
    %111 = vector.broadcast %107 : vector<1x16x1xf32> to vector<8x16x64xf32>
    %112 = arith.addf %110, %111 : vector<8x16x64xf32>
    %cst_105 = arith.constant 0.000000e+00 : f32
    %113 = vector.broadcast %cst_105 : f32 to vector<8x16x64xf32>
    %114 = arith.maximumf %112, %113 : vector<8x16x64xf32>
    %115 = vector.extract_strided_slice %114 {offsets = [7, 0, 0], sizes = [1, 16, 64], strides = [1, 1, 1]} : vector<8x16x64xf32> to vector<1x16x64xf32>
    %116 = vector.shape_cast %115 : vector<1x16x64xf32> to vector<16x64xf32>
    %c0_106 = arith.constant 0 : index
    %c0_107 = arith.constant 0 : index
    %117 = vector.load %arg16[%c0_106, %c0_107] : memref<64x32xf32, #tpu.memory_space<vmem>>, vector<64x32xf32>
    %cst_108 = arith.constant dense<0.000000e+00> : vector<16x32xf32>
    %118 = tpu.matmul %116, %117, %cst_108 {dimension_numbers = #tpu.dot_dimension_numbers<[1], [0], [0], [1], [0, 0, 1, 1], [], []>} : vector<16x64xf32>, vector<64x32xf32>, vector<16x32xf32> -> vector<16x32xf32>
    %c0_109 = arith.constant 0 : index
    %c0_110 = arith.constant 0 : index
    %119 = vector.load %arg17[%c0_109, %c0_110] : memref<1x32xf32, #tpu.memory_space<vmem>>, vector<1x32xf32>
    %120 = vector.broadcast %119 : vector<1x32xf32> to vector<16x32xf32>
    %121 = arith.addf %118, %120 : vector<16x32xf32>
    %cst_111 = arith.constant 0.000000e+00 : f32
    %122 = vector.broadcast %cst_111 : f32 to vector<16x32xf32>
    %123 = arith.maximumf %121, %122 : vector<16x32xf32>
    %c0_112 = arith.constant 0 : index
    %c0_113 = arith.constant 0 : index
    %124 = vector.load %arg18[%c0_112, %c0_113] : memref<32x4xf32, #tpu.memory_space<vmem>>, vector<32x4xf32>
    %cst_114 = arith.constant dense<0.000000e+00> : vector<16x4xf32>
    %125 = tpu.matmul %123, %124, %cst_114 {dimension_numbers = #tpu.dot_dimension_numbers<[1], [0], [0], [1], [0, 0, 1, 1], [], []>} : vector<16x32xf32>, vector<32x4xf32>, vector<16x4xf32> -> vector<16x4xf32>
    %c0_115 = arith.constant 0 : index
    %c0_116 = arith.constant 0 : index
    %126 = vector.load %arg19[%c0_115, %c0_116] : memref<1x4xf32, #tpu.memory_space<vmem>>, vector<1x4xf32>
    %127 = vector.broadcast %126 : vector<1x4xf32> to vector<16x4xf32>
    %128 = arith.addf %125, %127 : vector<16x4xf32>
    %c0_117 = arith.constant 0 : index
    %c0_118 = arith.constant 0 : index
    %c0_119 = arith.constant 0 : index
    %129 = vector.load %arg24[%c0_117, %c0_118, %c0_119] : memref<1x16x4xf32, #tpu.memory_space<vmem>>, vector<1x16x4xf32>
    %130 = vector.shape_cast %129 : vector<1x16x4xf32> to vector<16x4xf32>
    %131 = vector.shape_cast %128 : vector<16x4xf32> to vector<1x16x4xf32>
    tpu.vector_store %arg24[%c0_117, %c0_118, %c0_119], %131 {strides = array<i32>} : memref<1x16x4xf32, #tpu.memory_space<vmem>>, vector<1x16x4xf32>,
    %132 = vector.shape_cast %114 : vector<8x16x64xf32> to vector<128x64xf32>
    %c0_120 = arith.constant 0 : index
    %c0_121 = arith.constant 0 : index
    %133 = vector.load %arg20[%c0_120, %c0_121] : memref<64x64xf32, #tpu.memory_space<vmem>>, vector<64x64xf32>
    %cst_122 = arith.constant dense<0.000000e+00> : vector<128x64xf32>
    %134 = tpu.matmul %132, %133, %cst_122 {dimension_numbers = #tpu.dot_dimension_numbers<[1], [0], [0], [1], [0, 0, 1, 1], [], []>} : vector<128x64xf32>, vector<64x64xf32>, vector<128x64xf32> -> vector<128x64xf32>
    %c0_123 = arith.constant 0 : index
    %c0_124 = arith.constant 0 : index
    %135 = vector.load %arg21[%c0_123, %c0_124] : memref<1x64xf32, #tpu.memory_space<vmem>>, vector<1x64xf32>
    %136 = vector.broadcast %135 : vector<1x64xf32> to vector<128x64xf32>
    %137 = arith.addf %134, %136 : vector<128x64xf32>
    %cst_125 = arith.constant 0.000000e+00 : f32
    %138 = vector.broadcast %cst_125 : f32 to vector<128x64xf32>
    %139 = arith.maximumf %137, %138 : vector<128x64xf32>
    %c0_126 = arith.constant 0 : index
    %c0_127 = arith.constant 0 : index
    %140 = vector.load %arg22[%c0_126, %c0_127] : memref<64x4xf32, #tpu.memory_space<vmem>>, vector<64x4xf32>
    %cst_128 = arith.constant dense<0.000000e+00> : vector<128x4xf32>
    %141 = tpu.matmul %139, %140, %cst_128 {dimension_numbers = #tpu.dot_dimension_numbers<[1], [0], [0], [1], [0, 0, 1, 1], [], []>} : vector<128x64xf32>, vector<64x4xf32>, vector<128x4xf32> -> vector<128x4xf32>
    %c0_129 = arith.constant 0 : index
    %c0_130 = arith.constant 0 : index
    %142 = vector.load %arg23[%c0_129, %c0_130] : memref<1x4xf32, #tpu.memory_space<vmem>>, vector<1x4xf32>
    %143 = vector.broadcast %142 : vector<1x4xf32> to vector<128x4xf32>
    %144 = arith.addf %141, %143 : vector<128x4xf32>
    %145 = vector.shape_cast %144 : vector<128x4xf32> to vector<8x16x4xf32>
    %c0_131 = arith.constant 0 : index
    %c0_132 = arith.constant 0 : index
    %c0_133 = arith.constant 0 : index
    %c0_134 = arith.constant 0 : index
    %146 = vector.load %arg25[%c0_131, %c0_132, %c0_133, %c0_134] : memref<1x8x16x4xf32, #tpu.memory_space<vmem>>, vector<1x8x16x4xf32>
    %147 = vector.shape_cast %146 : vector<1x8x16x4xf32> to vector<8x16x4xf32>
    %148 = vector.shape_cast %145 : vector<8x16x4xf32> to vector<1x8x16x4xf32>
    tpu.vector_store %arg25[%c0_131, %c0_132, %c0_133, %c0_134], %148 {strides = array<i32>} : memref<1x8x16x4xf32, #tpu.memory_space<vmem>>, vector<1x8x16x4xf32>,
    return
  }
  func.func @transform_0(%arg0: i32) -> (i32, i32, i32, i32) {
    %c0_i32 = arith.constant 0 : i32
    %c0_i32_0 = arith.constant 0 : i32
    %c0_i32_1 = arith.constant 0 : i32
    %c0_i32_2 = arith.constant 0 : i32
    return %arg0, %c0_i32, %c0_i32_0, %c0_i32_1 : i32, i32, i32, i32
  }
  func.func @transform_1(%arg0: i32) -> (i32, i32) {
    %c0_i32 = arith.constant 0 : i32
    %c0_i32_0 = arith.constant 0 : i32
    %c0_i32_1 = arith.constant 0 : i32
    return %c0_i32, %c0_i32_0 : i32, i32
  }
  func.func @transform_2(%arg0: i32) -> (i32, i32) {
    %c0_i32 = arith.constant 0 : i32
    %c0_i32_0 = arith.constant 0 : i32
    %c0_i32_1 = arith.constant 0 : i32
    return %c0_i32, %c0_i32_0 : i32, i32
  }
  func.func @transform_3(%arg0: i32) -> (i32, i32) {
    %c0_i32 = arith.constant 0 : i32
    %c0_i32_0 = arith.constant 0 : i32
    %c0_i32_1 = arith.constant 0 : i32
    return %c0_i32, %c0_i32_0 : i32, i32
  }
  func.func @transform_4(%arg0: i32) -> (i32, i32) {
    %c0_i32 = arith.constant 0 : i32
    %c0_i32_0 = arith.constant 0 : i32
    %c0_i32_1 = arith.constant 0 : i32
    return %c0_i32, %c0_i32_0 : i32, i32
  }
  func.func @transform_5(%arg0: i32) -> (i32, i32) {
    %c0_i32 = arith.constant 0 : i32
    %c0_i32_0 = arith.constant 0 : i32
    %c0_i32_1 = arith.constant 0 : i32
    return %c0_i32, %c0_i32_0 : i32, i32
  }
  func.func @transform_6(%arg0: i32) -> (i32, i32, i32) {
    %c0_i32 = arith.constant 0 : i32
    %c0_i32_0 = arith.constant 0 : i32
    %c0_i32_1 = arith.constant 0 : i32
    %c0_i32_2 = arith.constant 0 : i32
    return %c0_i32, %c0_i32_0, %c0_i32_1 : i32, i32, i32
  }
  func.func @transform_7(%arg0: i32) -> (i32, i32) {
    %c0_i32 = arith.constant 0 : i32
    %c0_i32_0 = arith.constant 0 : i32
    %c0_i32_1 = arith.constant 0 : i32
    return %c0_i32, %c0_i32_0 : i32, i32
  }
  func.func @transform_8(%arg0: i32) -> (i32, i32, i32) {
    %c0_i32 = arith.constant 0 : i32
    %c0_i32_0 = arith.constant 0 : i32
    %c0_i32_1 = arith.constant 0 : i32
    %c0_i32_2 = arith.constant 0 : i32
    return %c0_i32, %c0_i32_0, %c0_i32_1 : i32, i32, i32
  }
  func.func @transform_9(%arg0: i32) -> (i32, i32) {
    %c0_i32 = arith.constant 0 : i32
    %c0_i32_0 = arith.constant 0 : i32
    %c0_i32_1 = arith.constant 0 : i32
    return %c0_i32, %c0_i32_0 : i32, i32
  }
  func.func @transform_10(%arg0: i32) -> (i32, i32) {
    %c0_i32 = arith.constant 0 : i32
    %c0_i32_0 = arith.constant 0 : i32
    %c0_i32_1 = arith.constant 0 : i32
    return %c0_i32, %c0_i32_0 : i32, i32
  }
  func.func @transform_11(%arg0: i32) -> (i32, i32) {
    %c0_i32 = arith.constant 0 : i32
    %c0_i32_0 = arith.constant 0 : i32
    %c0_i32_1 = arith.constant 0 : i32
    return %c0_i32, %c0_i32_0 : i32, i32
  }
  func.func @transform_12(%arg0: i32) -> (i32, i32) {
    %c0_i32 = arith.constant 0 : i32
    %c0_i32_0 = arith.constant 0 : i32
    %c0_i32_1 = arith.constant 0 : i32
    return %c0_i32, %c0_i32_0 : i32, i32
  }
  func.func @transform_13(%arg0: i32) -> (i32, i32) {
    %c0_i32 = arith.constant 0 : i32
    %c0_i32_0 = arith.constant 0 : i32
    %c0_i32_1 = arith.constant 0 : i32
    return %c0_i32, %c0_i32_0 : i32, i32
  }
  func.func @transform_14(%arg0: i32) -> (i32, i32) {
    %c0_i32 = arith.constant 0 : i32
    %c0_i32_0 = arith.constant 0 : i32
    %c0_i32_1 = arith.constant 0 : i32
    return %c0_i32, %c0_i32_0 : i32, i32
  }
  func.func @transform_15(%arg0: i32) -> (i32, i32) {
    %c0_i32 = arith.constant 0 : i32
    %c0_i32_0 = arith.constant 0 : i32
    %c0_i32_1 = arith.constant 0 : i32
    return %c0_i32, %c0_i32_0 : i32, i32
  }
  func.func @transform_16(%arg0: i32) -> (i32, i32) {
    %c0_i32 = arith.constant 0 : i32
    %c0_i32_0 = arith.constant 0 : i32
    %c0_i32_1 = arith.constant 0 : i32
    return %c0_i32, %c0_i32_0 : i32, i32
  }
  func.func @transform_17(%arg0: i32) -> (i32, i32) {
    %c0_i32 = arith.constant 0 : i32
    %c0_i32_0 = arith.constant 0 : i32
    %c0_i32_1 = arith.constant 0 : i32
    return %c0_i32, %c0_i32_0 : i32, i32
  }
  func.func @transform_18(%arg0: i32) -> (i32, i32) {
    %c0_i32 = arith.constant 0 : i32
    %c0_i32_0 = arith.constant 0 : i32
    %c0_i32_1 = arith.constant 0 : i32
    return %c0_i32, %c0_i32_0 : i32, i32
  }
  func.func @transform_19(%arg0: i32) -> (i32, i32) {
    %c0_i32 = arith.constant 0 : i32
    %c0_i32_0 = arith.constant 0 : i32
    %c0_i32_1 = arith.constant 0 : i32
    return %c0_i32, %c0_i32_0 : i32, i32
  }
  func.func @transform_20(%arg0: i32) -> (i32, i32) {
    %c0_i32 = arith.constant 0 : i32
    %c0_i32_0 = arith.constant 0 : i32
    %c0_i32_1 = arith.constant 0 : i32
    return %c0_i32, %c0_i32_0 : i32, i32
  }
  func.func @transform_21(%arg0: i32) -> (i32, i32) {
    %c0_i32 = arith.constant 0 : i32
    %c0_i32_0 = arith.constant 0 : i32
    %c0_i32_1 = arith.constant 0 : i32
    return %c0_i32, %c0_i32_0 : i32, i32
  }
  func.func @transform_22(%arg0: i32) -> (i32, i32) {
    %c0_i32 = arith.constant 0 : i32
    %c0_i32_0 = arith.constant 0 : i32
    %c0_i32_1 = arith.constant 0 : i32
    return %c0_i32, %c0_i32_0 : i32, i32
  }
  func.func @transform_23(%arg0: i32) -> (i32, i32, i32) {
    %c0_i32 = arith.constant 0 : i32
    %c0_i32_0 = arith.constant 0 : i32
    %c0_i32_1 = arith.constant 0 : i32
    return %arg0, %c0_i32, %c0_i32_0 : i32, i32, i32
  }
  func.func @transform_24(%arg0: i32) -> (i32, i32, i32, i32) {
    %c0_i32 = arith.constant 0 : i32
    %c0_i32_0 = arith.constant 0 : i32
    %c0_i32_1 = arith.constant 0 : i32
    %c0_i32_2 = arith.constant 0 : i32
    return %arg0, %c0_i32, %c0_i32_0, %c0_i32_1 : i32, i32, i32, i32
  }
}

</mosaic_0001>

<bundles_post_ra>
// kernel: stgcn_forward_impl.1
= control target key start
LH: loop header
LB: loop body
LE: loop exit
PB: predicated region body
PF: predicated region fallthrough
CT: control target
= control target key end

     0   :  { %s7251_s0 = inlined_call_operand.vmem [shape: f32[2,8,16,4], index: 0, kind: input, shape index: {}]   ;;  %s7252_s1 = inlined_call_operand.vmem [shape: f32[16,16], index: 1, kind: input, shape index: {}]   ;;  %s7253_s2 = inlined_call_operand.vmem [shape: f32[4,32], index: 2, kind: input, shape index: {}]   ;;  %s7254_s3 = inlined_call_operand.vmem [shape: f32[1,32], index: 3, kind: input, shape index: {}]   ;;  %s7255_s4 = inlined_call_operand.vmem [shape: f32[32,32], index: 4, kind: input, shape index: {}]   ;;  %s7256_s5 = inlined_call_operand.vmem [shape: f32[1,32], index: 5, kind: input, shape index: {}]   ;;  %s7257_s6 = inlined_call_operand.vmem [shape: f32[3,32,32], index: 6, kind: input, shape index: {}]   ;;  %s7258_s7 = inlined_call_operand.vmem [shape: f32[1,32], index: 7, kind: input, shape index: {}]   ;;  %s7259_s8 = inlined_call_operand.vmem [shape: f32[3,32,32], index: 8, kind: input, shape index: {}]   ;;  %s7260_s9 = inlined_call_operand.vmem [shape: f32[1,32], index: 9, kind: input, shape index: {}]   ;;  %s7261_s10 = inlined_call_operand.vmem [shape: f32[32,64], index: 10, kind: input, shape index: {}]   ;;  %s7262_s11 = inlined_call_operand.vmem [shape: f32[32,64], index: 11, kind: input, shape index: {}]   ;;  %s7263_s12 = inlined_call_operand.vmem [shape: f32[1,64], index: 12, kind: input, shape index: {}]   ;;  %s7264_s13 = inlined_call_operand.vmem [shape: f32[16,1], index: 13, kind: input, shape index: {}]   ;;  %s7265_s14 = inlined_call_operand.vmem [shape: f32[16,1], index: 14, kind: input, shape index: {}]   ;;  %s7266_s15 = inlined_call_operand.vmem [shape: f32[64,32], index: 15, kind: input, shape index: {}]   ;;  %s7267_s16 = inlined_call_operand.vmem [shape: f32[1,32], index: 16, kind: input, shape index: {}]   ;;  %s7268_s17 = inlined_call_operand.vmem [shape: f32[32,4], index: 17, kind: input, shape index: {}]   ;;  %s7269_s18 = inlined_call_operand.vmem [shape: f32[1,4], index: 18, kind: input, shape index: {}]   ;;  %s7270_s19 = inlined_call_operand.vmem [shape: f32[64,64], index: 19, kind: input, shape index: {}]   ;;  %s7271_s20 = inlined_call_operand.vmem [shape: f32[1,64], index: 20, kind: input, shape index: {}]   ;;  %s7272_s21 = inlined_call_operand.vmem [shape: f32[64,4], index: 21, kind: input, shape index: {}]   ;;  %s7273_s22 = inlined_call_operand.vmem [shape: f32[1,4], index: 22, kind: input, shape index: {}]   ;;  %s7274_s23 = inlined_call_operand.vmem [shape: f32[2,16,4], index: 23, kind: output, shape index: {0}]   ;;  %s7275_s24 = inlined_call_operand.vmem [shape: f32[2,8,16,4], index: 24, kind: output, shape index: {1}]  }
   0x1   :  { %7282 = sst [smem:[#allocation3_spill]] %s7251_s0 }
   0x2   :  { %7283 = sst [smem:[#allocation4_spill]] %s7252_s1 }
   0x3   :  { %7284 = sst [smem:[#allocation5_spill]] %s7253_s2 }
   0x4   :  { %7285 = sst [smem:[#allocation6_spill]] %s7254_s3 }
   0x5   :  { %7286 = sst [smem:[#allocation7_spill]] %s7255_s4 }
   0x6   :  { %7287 = sst [smem:[#allocation8_spill]] %s7256_s5  ;;  %s6257_s5 = smov 0  }
   0x7   :  { %7288 = sst [smem:[#allocation9_spill]] %s7257_s6 }
   0x8   :  { %7289 = sst [smem:[#allocation10_spill]] %s7258_s7 }
   0x9   :  { %7290 = sst [smem:[#allocation11_spill]] %s7259_s8 }
   0xa LB: > { %s4834_s26 = sadd.s32 4294967295, %s6129_s5   ;;  %p4838_p0 = scmp.ge.s32.totalorder %s6129_s5, 1  ;;  %s6129_s5 = sphi %s6257_s5, %s35_s5  }
   0xb   : > { %p665_p1 = scmp.lt.s32.totalorder %s6129_s5, 3 }
   0xd   : > { %p666_p2 = pnand %p4838_p0, %p665_p1 }
   0xe   : > { %p736_p3 = scmp.lt.s32.totalorder (!%p666_p2), %s4834_s26, 1  ;;  %s7291_s6 = sld [smem:[#allocation4_spill]] (!%p666_p2)  ;;  %vm769_vm0 = vcmask (!%p666_p2), 130048   ;;  %vm1433_vm1 = vcmask (!%p666_p2), 1043456   ;;  %vm1384_vm2 = vcmask (!%p666_p2), 31744   ;;  %vm2209_vm3 = vcmask (!%p666_p2), 261120  }
   0xf   : > { %669 = sbr.rel (%p666_p2) target bundleno = 2375 (0x947), region = 112  ;;  %s7292_s7 = sld [smem:[#allocation3_spill]] (!%p666_p2)  ;;  %vm4126_vm4 = vcmask (!%p666_p2), 523264  }
  0x10   : > { %s7293_s1 = sld [smem:[#allocation5_spill]] (!%p666_p2)  ;;  %s7294_s29 = sld [smem:[#allocation7_spill]] (!%p666_p2) }
  0x11   : > { %s7295_s27 = sld [smem:[#allocation6_spill]] (!%p666_p2)  ;;  %s7298_s8 = sld [smem:[#allocation8_spill]] (!%p666_p2) }
  0x14   : > { %v6268_v0 = vld [vmem:[%s7291_s6] sm:$0xff] (!%p666_p2)  ;;  %v6297_v15 = vld [vmem:[%s7291_s6 + $0x8] sm:$0xff] (!%p666_p2) }
  0x15   : > { %5397 = vmatprep.mubr.msk.f32.mxu0 (!%p666_p2), %vm769_vm0, %v6268_v0  ;;  %5404 = vmatprep.mubr.msk.f32.mxu1 (!%p666_p2), %vm769_vm0, %v6268_v0 }
  0x16   : > { %s7302_s26 = smov (!%p736_p3, %s4834_s26), 1  ;;  %v1376_v26 = vld [vmem:[%s7293_s1] sm:$0xf]  ;;  %v2199_v44 = vld [vmem:[%s7294_s29 + $0x8] sm:$0xff]  ;;  %v2200_v45 = vld [vmem:[%s7294_s29 + $0x10] sm:$0xff] }
  0x17   : > { %s7280_s2 = sshll.u32 %s7302_s26, 7  ;;  %v2198_v43 = vld [vmem:[%s7294_s29] sm:$0xff]  ;;  %v2201_v47 = vld [vmem:[%s7294_s29 + $0x18] sm:$0xff]  ;;  %s5084_s6 = sshll.u32 %s7302_s26, 4 }
  0x18   : > { %s6282_s30 = scalar_lea.vmem %s7292_s7, %s7280_s2  ;;  %v5966_v46 = vpack.c.bf16 %v2199_v44, %v2198_v43  ;;  %v5970_v48 = vpack.c.bf16 %v2201_v47, %v2200_v45  ;;  %v6369_v49 = vld [vmem:[%s7295_s27] ss:$0 sm:$0xff]  ;;  %s7296_s7 = sld [smem:[#allocation9_spill]] }
  0x19   : > { %v753_v1 = vld [vmem:[%s6282_s30] sm:$0xff]  ;;  %v754_v2 = vld [vmem:[%s6282_s30 + $0x8] sm:$0xff]  ;;  %v755_v3 = vld [vmem:[%s6282_s30 + $0x10] sm:$0xff]  ;;  %s745_s4 = scalar_lea.vmem %s7274_s23, %s5084_s6  ;;  %s7300_s6 = sshll.u32 %s7302_s26, 7 }
  0x1a   : > { %v5902_v4 = vpack.c.bf16 %v754_v2, %v753_v1  ;;  %v756_v5 = vld [vmem:[%s6282_s30 + $0x18] sm:$0xff]  ;;  %v757_v6 = vld [vmem:[%s6282_s30 + $0x20] sm:$0xff]  ;;  %v758_v7 = vld [vmem:[%s6282_s30 + $0x28] sm:$0xff]  ;;  %s7214_s25 = scalar_lea.vmem %s7275_s24, %s7300_s6 }
  0x1b   : > { %v5906_v8 = vpack.c.bf16 %v756_v5, %v755_v3  ;;  %v5910_v9 = vpack.c.bf16 %v758_v7, %v757_v6  ;;  %v759_v10 = vld [vmem:[%s6282_s30 + $0x30] sm:$0xff]  ;;  %v760_v11 = vld [vmem:[%s6282_s30 + $0x38] sm:$0xff]  ;;  %v761_v13 = vld [vmem:[%s6282_s30 + $0x40] sm:$0xff] }
  0x1c   : > { %5903 = vmatprep.subr.bf16.mxu0 %v5902_v4  ;;  %v5914_v12 = vpack.c.bf16 %v760_v11, %v759_v10  ;;  %v762_v14 = vld [vmem:[%s6282_s30 + $0x48] sm:$0xff]  ;;  %v763_v16 = vld [vmem:[%s6282_s30 + $0x50] sm:$0xff]  ;;  %v764_v17 = vld [vmem:[%s6282_s30 + $0x58] sm:$0xff] }
  0x1d   : > { %5905 = vmatpush3.bf16.msra.mxu0 %v5902_v4  ;;  %5907 = vmatprep.subr.bf16.mxu1 %v5906_v8  ;;  %v5918_v18 = vpack.c.bf16 %v762_v14, %v761_v13  ;;  %v5922_v19 = vpack.c.bf16 %v764_v17, %v763_v16  ;;  %v765_v20 = vld [vmem:[%s6282_s30 + $0x60] sm:$0xff]  ;;  %v766_v21 = vld [vmem:[%s6282_s30 + $0x68] sm:$0xff]  ;;  %v767_v22 = vld [vmem:[%s6282_s30 + $0x70] sm:$0xff] }
  0x1e   : > { %5909 = vmatpush3.bf16.msra.mxu1 %v5906_v8  ;;  %5911 = vmatprep.subr.bf16.mxu0 %v5910_v9  ;;  %v768_v23 = vld [vmem:[%s6282_s30 + $0x78] sm:$0xff]  ;;  %v5926_v24 = vpack.c.bf16 %v766_v21, %v765_v20  ;;  %v4913_v44 = vld [vmem:[%s7296_s7 + $0x40] sm:$0xff]  ;;  %v4914_v45 = vld [vmem:[%s7296_s7 + $0x48] sm:$0xff]  ;;  %s7297_s30 = sld [smem:[#allocation10_spill]] }
  0x1f   : > { %5915 = vmatprep.subr.bf16.mxu1 %v5914_v12  ;;  %v5930_v25 = vpack.c.bf16 %v768_v23, %v767_v22 }
  0x20   : > { %5398 = vmatmul.mubr.msk.f32.vlgmr.msra.gmra.mrb[0].mxu0 %vm769_vm0, %v6297_v15 }
  0x21   : > { %5405 = vmatmul.mubr.msk.f32.vlgmr.msra.gmra.mrb[0].mxu1 %vm769_vm0, %v6297_v15  ;;  %5913 = vmatpush3.bf16.msra.mxu0 %v5910_v9 }
  0x22   : > { %5411 = vmatprep.mubr.msk.f32.mxu0 %vm769_vm0, %v6268_v0  ;;  %5917 = vmatpush3.bf16.msra.mxu1 %v5914_v12 }
  0x23   : > { %5418 = vmatprep.mubr.msk.f32.mxu1 %vm769_vm0, %v6268_v0  ;;  %5919 = vmatprep.subr.bf16.mxu0 %v5918_v18 }
  0x24   : > { %5412 = vmatmul.mubr.msk.f32.vlgmr.msra.gmra.mrb[2].mxu0 %vm769_vm0, %v6297_v15  ;;  %5923 = vmatprep.subr.bf16.mxu1 %v5922_v19 }
  0x25   : > { %5419 = vmatmul.mubr.msk.f32.vlgmr.msra.gmra.mrb[2].mxu1 %vm769_vm0, %v6297_v15  ;;  %5921 = vmatpush3.bf16.msra.mxu0 %v5918_v18 }
  0x26   : > { %5425 = vmatprep.mubr.msk.f32.mxu0 %vm769_vm0, %v6268_v0  ;;  %5925 = vmatpush3.bf16.msra.mxu1 %v5922_v19 }
  0x27   : > { %5432 = vmatprep.mubr.msk.f32.mxu1 %vm769_vm0, %v6268_v0  ;;  %5927 = vmatprep.subr.bf16.mxu0 %v5926_v24 }
  0x28   : > { %5426 = vmatmul.mubr.msk.f32.vlgmr.msra.gmra.mrb[4].mxu0 %vm769_vm0, %v6297_v15  ;;  %5931 = vmatprep.subr.bf16.mxu1 %v5930_v25 }
  0x29   : > { %5433 = vmatmul.mubr.msk.f32.vlgmr.msra.gmra.mrb[4].mxu1 %vm769_vm0, %v6297_v15  ;;  %5929 = vmatpush3.bf16.msra.mxu0 %v5926_v24 }
  0x2a   : > { %5439 = vmatprep.mubr.msk.f32.mxu0 %vm769_vm0, %v6268_v0  ;;  %5933 = vmatpush3.bf16.msra.mxu1 %v5930_v25 }
  0x2b   : > { %5446 = vmatprep.mubr.msk.f32.mxu1 %vm769_vm0, %v6268_v0  ;;  %5449 = vmatprep.subr.msk.mxu0 %vm1433_vm1, %v1376_v26 }
  0x2c   : > { %5440 = vmatmul.mubr.msk.f32.vlgmr.msra.gmra.mrb[6].mxu0 %vm769_vm0, %v6297_v15  ;;  %6094 = vmatprep.subr.msk.mxu1 %vm1433_vm1, %v1376_v26 }
  0x2d   : > { %5447 = vmatmul.mubr.msk.f32.vlgmr.msra.gmra.mrb[6].mxu1 %vm769_vm0, %v6297_v15  ;;  %5450 = vmatpush3.msk.msra.mxu0 %vm1433_vm1, %v1376_v26 }
  0x2e   : > { %6095 = vmatpush3.msk.msra.mxu1 %vm1433_vm1, %v1376_v26  ;;  %5967 = vmatprep.subr.bf16.mxu0 %v5966_v46 }
  0xf3   : > { %v5399_v27 = vpop.f32.mrb[0].mxu0 }
  0xf4   : > { %v842_v28 = vpop.f32.mrb[1].mxu0  ;;  %v5406_v29 = vpop.f32.mrb[0].mxu1 }
  0xf5   : > { %5451 = vmatprep.mubr.msk.f32.mxu0 %vm1384_vm2, %v842_v28  ;;  %v917_v30 = vpop.f32.mrb[1].mxu1 }
  0xf6   : > { %5452 = vmatmul.mubr.msk.f32.vlgmr.msra.gmra.mrb[8].mxu0 %vm1384_vm2, %v5399_v27 }
  0xf7   : > { %5454 = vmatprep.mubr.msk.f32.mxu0 %vm1384_vm2, %v917_v30  ;;  %v5413_v31 = vpop.f32.mrb[2].mxu0  ;;  %5969 = vmatpush3.bf16.msra.mxu0 %v5966_v46  ;;  %v5974_v46 = vpack.c.bf16 %v4914_v45, %v4913_v44 }
  0xf8   : > { %v992_v32 = vpop.f32.mrb[3].mxu0  ;;  %v5420_v33 = vpop.f32.mrb[2].mxu1  ;;  %5971 = vmatprep.subr.bf16.mxu0 %v5970_v48 }
  0xf9   : > { %v1067_v34 = vpop.f32.mrb[3].mxu1 }
  0xfa   : > { %5455 = vmatmul.mubr.msk.f32.gmra.mrb[10].mxu0 %vm1384_vm2, %v5406_v29 }
  0xfb   : > { %5457 = vmatprep.mubr.msk.f32.mxu0 %vm1384_vm2, %v992_v32  ;;  %v5427_v35 = vpop.f32.mrb[4].mxu0  ;;  %5973 = vmatpush3.bf16.msra.mxu0 %v5970_v48 }
  0xfc   : > { %v1142_v36 = vpop.f32.mrb[5].mxu0  ;;  %v5434_v37 = vpop.f32.mrb[4].mxu1 }
  0xfd   : > { %5463 = vmatprep.mubr.msk.f32.mxu1 %vm1384_vm2, %v1142_v36  ;;  %v1217_v38 = vpop.f32.mrb[5].mxu1 }
  0xfe   : > { %5458 = vmatmul.mubr.msk.f32.gmra.mrb[12].mxu0 %vm1384_vm2, %v5413_v31  ;;  %5464 = vmatmul.mubr.msk.f32.vlgmr.msra.gmra.mrb[8].mxu1 %vm1384_vm2, %v5427_v35 }
  0xff   : > { %5460 = vmatprep.mubr.msk.f32.mxu0 %vm1384_vm2, %v1067_v34  ;;  %5466 = vmatprep.mubr.msk.f32.mxu1 %vm1384_vm2, %v1217_v38  ;;  %v5441_v39 = vpop.f32.mrb[6].mxu0 }
 0x100   : > { %v1292_v40 = vpop.f32.mrb[7].mxu0  ;;  %v5448_v41 = vpop.f32.mrb[6].mxu1 }
 0x101   : > { %v1367_v42 = vpop.f32.mrb[7].mxu1 }
 0x102   : > { %5461 = vmatmul.mubr.msk.f32.gmra.mrb[14].mxu0 %vm1384_vm2, %v5420_v33  ;;  %5467 = vmatmul.mubr.msk.f32.gmra.mrb[10].mxu1 %vm1384_vm2, %v5434_v37 }
 0x103   : > { %5469 = vmatprep.mubr.msk.f32.mxu1 %vm1384_vm2, %v1292_v40 }
 0x106   : > { %5470 = vmatmul.mubr.msk.f32.gmra.mrb[12].mxu1 %vm1384_vm2, %v5441_v39 }
 0x107   : > { %5472 = vmatprep.mubr.msk.f32.mxu1 %vm1384_vm2, %v1367_v42 }
 0x10a   : > { %5473 = vmatmul.mubr.msk.f32.gmra.mrb[14].mxu1 %vm1384_vm2, %v5448_v41 }
 0x10b   : > { %5479 = vmatprep.mubr.msk.f32.mxu1 %vm769_vm0, %v6268_v0 }
 0x1c9   : > { %v5453_v50 = vpop.f32.mrb[8].mxu0 }
 0x1ca   : > { %v1509_v51 = vadd.f32 %v5453_v50, %v6369_v49  ;;  %v1503_v52 = vpop.f32.mrb[9].mxu0 }
 0x1cb   : > { %v1504_v53 = vadd.f32 %v6369_v49, %v1503_v52 }
 0x1cc   : > { %v1583_v54 = vmax.f32 %v1509_v51, 0.0 }
 0x1cd   : > { %v1582_v55 = vmax.f32 %v1504_v53, 0.0  ;;  %v5456_v56 = vpop.f32.mrb[10].mxu0 }
 0x1ce   : > { %v1519_v57 = vadd.f32 %v5456_v56, %v6369_v49  ;;  %v1513_v58 = vpop.f32.mrb[11].mxu0 }
 0x1cf   : > { %v5934_v59 = vpack.c.bf16 %v1583_v54, %v1582_v55  ;;  %v1514_v60 = vadd.f32 %v6369_v49, %v1513_v58 }
 0x1d0   : > { %v1585_v61 = vmax.f32 %v1519_v57, 0.0 }
 0x1d1   : > { %v1584_v62 = vmax.f32 %v1514_v60, 0.0  ;;  %v5459_v63 = vpop.f32.mrb[12].mxu0  ;;  %5935 = vmatprep.subr.bf16.mxu1 %v5934_v59  ;;  %v5465_v1 = vpop.f32.mrb[8].mxu1 }
 0x1d2   : > { %v1529_v2 = vadd.f32 %v5459_v63, %v6369_v49  ;;  %v1523_v3 = vpop.f32.mrb[13].mxu0  ;;  %5937 = vmatpush3.bf16.msra.mxu1 %v5934_v59  ;;  %v1549_v4 = vadd.f32 %v5465_v1, %v6369_v49  ;;  %v1543_v5 = vpop.f32.mrb[9].mxu1  ;;  %v4915_v1 = vld [vmem:[%s7296_s7 + $0x50] sm:$0xff] }
 0x1d3   : > { %v5938_v6 = vpack.c.bf16 %v1585_v61, %v1584_v62  ;;  %v1524_v7 = vadd.f32 %v6369_v49, %v1523_v3  ;;  %v1544_v8 = vadd.f32 %v6369_v49, %v1543_v5  ;;  %v4933_v61 = vld [vmem:[%s7296_s7 + $0x20] sm:$0xff]  ;;  %v4934_v62 = vld [vmem:[%s7296_s7 + $0x28] sm:$0xff]  ;;  %v4936_v5 = vld [vmem:[%s7296_s7 + $0x38] sm:$0xff] }
 0x1d4   : > { %v1587_v9 = vmax.f32 %v1529_v2, 0.0  ;;  %v1591_v10 = vmax.f32 %v1549_v4, 0.0  ;;  %v5982_v63 = vpack.c.bf16 %v4934_v62, %v4933_v61  ;;  %v4916_v2 = vld [vmem:[%s7296_s7 + $0x58] sm:$0xff]  ;;  %v4935_v4 = vld [vmem:[%s7296_s7 + $0x30] sm:$0xff] }
 0x1d5   : > { %v1586_v11 = vmax.f32 %v1524_v7, 0.0  ;;  %v5462_v12 = vpop.f32.mrb[14].mxu0  ;;  %5480 = vmatmul.mubr.msk.f32.vlgmr.msra.gmra.mrb[16].mxu1 %vm769_vm0, %v6297_v15  ;;  %5939 = vmatprep.subr.bf16.mxu1 %v5938_v6  ;;  %v1590_v13 = vmax.f32 %v1544_v8, 0.0  ;;  %v5468_v14 = vpop.f32.mrb[10].mxu1  ;;  %v5978_v3 = vpack.c.bf16 %v4916_v2, %v4915_v1  ;;  %v2871_v7 = vld [vmem:[%s7296_s7] sm:$0xff]  ;;  %v2872_v8 = vld [vmem:[%s7296_s7 + $0x8] sm:$0xff] }
 0x1d6   : > { %v1539_v16 = vadd.f32 %v5462_v12, %v6369_v49  ;;  %v1533_v17 = vpop.f32.mrb[15].mxu0  ;;  %5941 = vmatpush3.bf16.msra.mxu1 %v5938_v6  ;;  %5486 = vmatprep.mubr.msk.f32.mxu1 %vm769_vm0, %v6268_v0  ;;  %v1559_v18 = vadd.f32 %v5468_v14, %v6369_v49  ;;  %v1553_v19 = vpop.f32.mrb[11].mxu1  ;;  %v5986_v6 = vpack.c.bf16 %v4936_v5, %v4935_v4 }
 0x1d7   : > { %v5942_v20 = vpack.c.bf16 %v1587_v9, %v1586_v11  ;;  %v1534_v21 = vadd.f32 %v6369_v49, %v1533_v17  ;;  %v5950_v22 = vpack.c.bf16 %v1591_v10, %v1590_v13  ;;  %v1554_v23 = vadd.f32 %v6369_v49, %v1553_v19  ;;  %5983 = vmatprep.subr.bf16.mxu0 %v5982_v63  ;;  %v4912_v10 = vld [vmem:[%s7297_s30] ss:$0 sm:$0xff]  ;;  %v2873_v17 = vld [vmem:[%s7296_s7 + $0x10] sm:$0xff]  ;;  %s7299_s30 = sld [smem:[#allocation11_spill]] }
 0x1d8   : > { %v1589_v24 = vmax.f32 %v1539_v16, 0.0  ;;  %v1593_v25 = vmax.f32 %v1559_v18, 0.0  ;;  %v5990_v9 = vpack.c.bf16 %v2872_v8, %v2871_v7  ;;  %2427 = vst.msk [vmem:[#allocation2 + $0x8] sm:$0xff] %vm2209_vm3, %v4912_v10  ;;  %2426 = vst.msk [vmem:[#allocation2] sm:$0xff] %vm2209_vm3, %v4912_v10  ;;  %v6485_v11 = vld [vmem:[%s7298_s8] ss:$0 sm:$0xff] }
 0x1d9   : > { %v1588_v26 = vmax.f32 %v1534_v21, 0.0  ;;  %5487 = vmatmul.mubr.msk.f32.vlgmr.msra.gmra.mrb[18].mxu1 %vm769_vm0, %v6297_v15  ;;  %5943 = vmatprep.subr.bf16.mxu1 %v5942_v20  ;;  %v1592_v27 = vmax.f32 %v1554_v23, 0.0  ;;  %v5471_v28 = vpop.f32.mrb[12].mxu1  ;;  %2428 = vst.msk [vmem:[#allocation2 + $0x10] sm:$0xff] %vm2209_vm3, %v4912_v10  ;;  %2429 = vst.msk [vmem:[#allocation2 + $0x18] sm:$0xff] %vm2209_vm3, %v4912_v10  ;;  %v2874_v18 = vld [vmem:[%s7296_s7 + $0x18] sm:$0xff] }
 0x1da   : > { %5945 = vmatpush3.bf16.msra.mxu1 %v5942_v20  ;;  %5493 = vmatprep.mubr.msk.f32.mxu1 %vm769_vm0, %v6268_v0  ;;  %v1569_v29 = vadd.f32 %v5471_v28, %v6369_v49  ;;  %v1563_v30 = vpop.f32.mrb[13].mxu1  ;;  %2430 = vst.msk [vmem:[#allocation2 + $0x20] sm:$0xff] %vm2209_vm3, %v4912_v10  ;;  %2431 = vst.msk [vmem:[#allocation2 + $0x28] sm:$0xff] %vm2209_vm3, %v4912_v10 }
 0x1db   : > { %v5946_v31 = vpack.c.bf16 %v1589_v24, %v1588_v26  ;;  %v5954_v32 = vpack.c.bf16 %v1593_v25, %v1592_v27  ;;  %v1564_v33 = vadd.f32 %v6369_v49, %v1563_v30  ;;  %2432 = vst.msk [vmem:[#allocation2 + $0x30] sm:$0xff] %vm2209_vm3, %v4912_v10  ;;  %2433 = vst.msk [vmem:[#allocation2 + $0x38] sm:$0xff] %vm2209_vm3, %v4912_v10 }
 0x1dc   : > { %v1595_v34 = vmax.f32 %v1569_v29, 0.0  ;;  %2434 = vst.msk [vmem:[#allocation2 + $0x40] sm:$0xff] %vm2209_vm3, %v4912_v10  ;;  %2435 = vst.msk [vmem:[#allocation2 + $0x48] sm:$0xff] %vm2209_vm3, %v4912_v10  ;;  %v5994_v24 = vpack.c.bf16 %v2874_v18, %v2873_v17 }
 0x1dd   : > { %5494 = vmatmul.mubr.msk.f32.vlgmr.msra.gmra.mrb[20].mxu1 %vm769_vm0, %v6297_v15  ;;  %5947 = vmatprep.subr.bf16.mxu1 %v5946_v31  ;;  %v1594_v35 = vmax.f32 %v1564_v33, 0.0  ;;  %v5474_v36 = vpop.f32.mrb[14].mxu1  ;;  %2436 = vst.msk [vmem:[#allocation2 + $0x50] sm:$0xff] %vm2209_vm3, %v4912_v10  ;;  %2437 = vst.msk [vmem:[#allocation2 + $0x58] sm:$0xff] %vm2209_vm3, %v4912_v10  ;;  %v4964_v62 = vld [vmem:[%s7299_s30 + $0x40] sm:$0xff]  ;;  %v4966_v5 = vld [vmem:[%s7299_s30 + $0x50] sm:$0xff] }
 0x1de   : > { %5949 = vmatpush3.bf16.msra.mxu1 %v5946_v31  ;;  %5500 = vmatprep.mubr.msk.f32.mxu1 %vm769_vm0, %v6268_v0  ;;  %v1579_v37 = vadd.f32 %v5474_v36, %v6369_v49  ;;  %v1573_v38 = vpop.f32.mrb[15].mxu1  ;;  %2438 = vst.msk [vmem:[#allocation2 + $0x60] sm:$0xff] %vm2209_vm3, %v4912_v10  ;;  %2439 = vst.msk [vmem:[#allocation2 + $0x68] sm:$0xff] %vm2209_vm3, %v4912_v10  ;;  %v4984_v2 = vld [vmem:[%s7299_s30 + $0x20] sm:$0xff]  ;;  %v4986_v8 = vld [vmem:[%s7299_s30 + $0x30] sm:$0xff] }
 0x1df   : > { %5951 = vmatprep.subr.bf16.mxu1 %v5950_v22  ;;  %v5958_v39 = vpack.c.bf16 %v1595_v34, %v1594_v35  ;;  %v1574_v40 = vadd.f32 %v6369_v49, %v1573_v38  ;;  %2440 = vst.msk [vmem:[#allocation2 + $0x70] sm:$0xff] %vm2209_vm3, %v4912_v10  ;;  %2441 = vst.msk [vmem:[#allocation2 + $0x78] sm:$0xff] %vm2209_vm3, %v4912_v10 }
 0x1e0   : > { %v1597_v41 = vmax.f32 %v1579_v37, 0.0 }
 0x1e1   : > { %5501 = vmatmul.mubr.msk.f32.vlgmr.msra.gmra.mrb[22].mxu1 %vm769_vm0, %v6297_v15  ;;  %v1596_v42 = vmax.f32 %v1574_v40, 0.0 }
 0x1e2   : > { %5953 = vmatpush3.bf16.msra.mxu1 %v5950_v22  ;;  %5507 = vmatprep.mubr.msk.f32.mxu1 %vm769_vm0, %v6268_v0 }
 0x1e3   : > { %5955 = vmatprep.subr.bf16.mxu1 %v5954_v32  ;;  %v5962_v43 = vpack.c.bf16 %v1597_v41, %v1596_v42 }
 0x1e5   : > { %5508 = vmatmul.mubr.msk.f32.vlgmr.msra.gmra.mrb[24].mxu1 %vm769_vm0, %v6297_v15 }
 0x1e6   : > { %5957 = vmatpush3.bf16.msra.mxu1 %v5954_v32  ;;  %5514 = vmatprep.mubr.msk.f32.mxu1 %vm769_vm0, %v6268_v0 }
 0x1e7   : > { %5959 = vmatprep.subr.bf16.mxu1 %v5958_v39 }
 0x1e9   : > { %5515 = vmatmul.mubr.msk.f32.vlgmr.msra.gmra.mrb[26].mxu1 %vm769_vm0, %v6297_v15 }
 0x1ea   : > { %5961 = vmatpush3.bf16.msra.mxu1 %v5958_v39  ;;  %5521 = vmatprep.mubr.msk.f32.mxu1 %vm769_vm0, %v6268_v0 }
 0x1eb   : > { %5963 = vmatprep.subr.bf16.mxu1 %v5962_v43 }
 0x1ed   : > { %5522 = vmatmul.mubr.msk.f32.vlgmr.msra.gmra.mrb[28].mxu1 %vm769_vm0, %v6297_v15 }
 0x1ee   : > { %5965 = vmatpush3.bf16.msra.mxu1 %v5962_v43  ;;  %5528 = vmatprep.mubr.msk.f32.mxu1 %vm769_vm0, %v6268_v0 }
 0x1ef   : > { %5975 = vmatprep.subr.bf16.mxu1 %v5974_v46 }
 0x1f1   : > { %5529 = vmatmul.mubr.msk.f32.vlgmr.msra.gmra.mrb[30].mxu1 %vm769_vm0, %v6297_v15 }
 0x1f2   : > { %5977 = vmatpush3.bf16.msra.mxu1 %v5974_v46 }
 0x1f3   : > { %5979 = vmatprep.subr.bf16.mxu1 %v5978_v3 }
 0x1f6   : > { %5981 = vmatpush3.bf16.msra.mxu1 %v5978_v3  ;;  %v4985_v3 = vld [vmem:[%s7299_s30 + $0x28] sm:$0xff] }
 0x1f7   : > { %5991 = vmatprep.subr.bf16.mxu1 %v5990_v9  ;;  %v6006_v4 = vpack.c.bf16 %v4985_v3, %v4984_v2 }
 0x2a8   : > { %v5481_v47 = vpop.f32.mrb[16].mxu1 }
 0x2a9   : > { %v1664_v48 = vpop.f32.mrb[17].mxu1 }
 0x2aa   : > { %5539 = vmatprep.mubr.msk.f32.mxu0 %vm2209_vm3, %v1664_v48 }
 0x2ab   : > { %5540 = vmatmul.mubr.msk.f32.vlgmr.msra.gmra.mrb[16].mxu0 %vm2209_vm3, %v5481_v47 }
 0x2ac   : > { %v5488_v0 = vpop.f32.mrb[18].mxu1  ;;  %5985 = vmatpush3.bf16.msra.mxu0 %v5982_v63  ;;  %v4965_v63 = vld [vmem:[%s7299_s30 + $0x48] sm:$0xff] }
 0x2ad   : > { %v1739_v15 = vpop.f32.mrb[19].mxu1  ;;  %5987 = vmatprep.subr.bf16.mxu0 %v5986_v6  ;;  %v5998_v1 = vpack.c.bf16 %v4965_v63, %v4964_v62 }
 0x2ae   : > { %5542 = vmatprep.mubr.msk.f32.mxu0 %vm2209_vm3, %v1739_v15 }
 0x2af   : > { %5543 = vmatmul.mubr.msk.f32.gmra.mrb[18].mxu0 %vm2209_vm3, %v5488_v0 }
 0x2b0   : > { %v5495_v49 = vpop.f32.mrb[20].mxu1  ;;  %5989 = vmatpush3.bf16.msra.mxu0 %v5986_v6  ;;  %v4967_v6 = vld [vmem:[%s7299_s30 + $0x58] sm:$0xff] }
 0x2b1   : > { %v1814_v50 = vpop.f32.mrb[21].mxu1  ;;  %5999 = vmatprep.subr.bf16.mxu0 %v5998_v1  ;;  %v6002_v7 = vpack.c.bf16 %v4967_v6, %v4966_v5 }
 0x2b2   : > { %5545 = vmatprep.mubr.msk.f32.mxu0 %vm2209_vm3, %v1814_v50 }
 0x2b3   : > { %5546 = vmatmul.mubr.msk.f32.gmra.mrb[20].mxu0 %vm2209_vm3, %v5495_v49 }
 0x2b4   : > { %v5502_v51 = vpop.f32.mrb[22].mxu1 }
 0x2b5   : > { %v1889_v52 = vpop.f32.mrb[23].mxu1 }
 0x2b6   : > { %5548 = vmatprep.mubr.msk.f32.mxu0 %vm2209_vm3, %v1889_v52 }
 0x2b7   : > { %5549 = vmatmul.mubr.msk.f32.gmra.mrb[22].mxu0 %vm2209_vm3, %v5502_v51 }
 0x2b8   : > { %v5509_v53 = vpop.f32.mrb[24].mxu1 }
 0x2b9   : > { %v1964_v54 = vpop.f32.mrb[25].mxu1 }
 0x2ba   : > { %5551 = vmatprep.mubr.msk.f32.mxu0 %vm2209_vm3, %v1964_v54 }
 0x2bb   : > { %5552 = vmatmul.mubr.msk.f32.gmra.mrb[24].mxu0 %vm2209_vm3, %v5509_v53 }
 0x2bc   : > { %v5516_v55 = vpop.f32.mrb[26].mxu1 }
 0x2bd   : > { %v2039_v56 = vpop.f32.mrb[27].mxu1 }
 0x2be   : > { %5554 = vmatprep.mubr.msk.f32.mxu0 %vm2209_vm3, %v2039_v56 }
 0x2bf   : > { %5555 = vmatmul.mubr.msk.f32.gmra.mrb[26].mxu0 %vm2209_vm3, %v5516_v55 }
 0x2c0   : > { %v5523_v57 = vpop.f32.mrb[28].mxu1 }
 0x2c1   : > { %v2114_v58 = vpop.f32.mrb[29].mxu1 }
 0x2c2   : > { %5557 = vmatprep.mubr.msk.f32.mxu0 %vm2209_vm3, %v2114_v58 }
 0x2c3   : > { %5558 = vmatmul.mubr.msk.f32.gmra.mrb[28].mxu0 %vm2209_vm3, %v5523_v57 }
 0x2c4   : > { %v5530_v59 = vpop.f32.mrb[30].mxu1 }
 0x2c5   : > { %v2189_v60 = vpop.f32.mrb[31].mxu1 }
 0x2c6   : > { %5560 = vmatprep.mubr.msk.f32.mxu0 %vm2209_vm3, %v2189_v60 }
 0x2c7   : > { %5561 = vmatmul.mubr.msk.f32.gmra.mrb[30].mxu0 %vm2209_vm3, %v5530_v59 }
 0x37e   : > { %v5541_v12 = vpop.f32.mrb[16].mxu0 }
 0x37f   : > { %v2330_v13 = vadd.f32 %v5541_v12, %v6485_v11  ;;  %v2324_v14 = vpop.f32.mrb[17].mxu0  ;;  %v3505_v12 = vld [vmem:[%s7299_s30 + $0x8] sm:$0xff] }
 0x380   : > { %v2325_v16 = vadd.f32 %v6485_v11, %v2324_v14  ;;  %v2641_v14 = vld [vmem:[#allocation2 + $0x8] sm:$0xff] }
 0x381   : > { %v6497_v21 = vmax.f32 %v2330_v13, 0.0 }
 0x382   : > { %v6495_v19 = vmax.f32 %v2325_v16, 0.0  ;;  %v5544_v20 = vpop.f32.mrb[18].mxu0  ;;  %v2640_v16 = vld [vmem:[#allocation2] sm:$0xff] }
 0x383   : > { %v2340_v22 = vadd.f32 %v5544_v20, %v6485_v11  ;;  %v2334_v23 = vpop.f32.mrb[19].mxu0 }
 0x384   : > { %v2335_v25 = vadd.f32 %v6485_v11, %v2334_v23  ;;  %5571 = vmatprep.mubr.msk.f32.mxu1 %vm2209_vm3, %v6495_v19  ;;  %5603 = vmatprep.mubr.msk.f32.mxu0 %vm2209_vm3, %v6495_v19 }
 0x385   : > { %5572 = vmatmul.mubr.msk.f32.vlgmr.msra.gmra.mrb[32].mxu1 %vm2209_vm3, %v6497_v21  ;;  %5604 = vmatmul.mubr.msk.f32.vlgmr.msra.gmra.mrb[32].mxu0 %vm2209_vm3, %v6497_v21  ;;  %v6511_v28 = vmax.f32 %v2340_v22, 0.0 }
 0x386   : > { %v6509_v26 = vmax.f32 %v2335_v25, 0.0  ;;  %v5547_v27 = vpop.f32.mrb[20].mxu0  ;;  %5993 = vmatpush3.bf16.msra.mxu1 %v5990_v9  ;;  %6001 = vmatpush3.bf16.msra.mxu0 %v5998_v1  ;;  %v4987_v9 = vld [vmem:[%s7299_s30 + $0x38] sm:$0xff] }
 0x387   : > { %v2350_v29 = vadd.f32 %v5547_v27, %v6485_v11  ;;  %v2344_v30 = vpop.f32.mrb[21].mxu0  ;;  %5995 = vmatprep.subr.bf16.mxu1 %v5994_v24  ;;  %v6010_v10 = vpack.c.bf16 %v4987_v9, %v4986_v8  ;;  %6003 = vmatprep.subr.bf16.mxu0 %v6002_v7  ;;  %v2643_v25 = vld [vmem:[#allocation2 + $0x18] sm:$0xff]  ;;  %v2642_v27 = vld [vmem:[#allocation2 + $0x10] sm:$0xff]  ;;  %v2649_v9 = vld [vmem:[#allocation2 + $0x48] sm:$0xff] }
 0x388   : > { %v2345_v31 = vadd.f32 %v6485_v11, %v2344_v30  ;;  %5574 = vmatprep.mubr.msk.f32.mxu1 %vm2209_vm3, %v6509_v26  ;;  %5606 = vmatprep.mubr.msk.f32.mxu0 %vm2209_vm3, %v6509_v26 }
 0x389   : > { %5575 = vmatmul.mubr.msk.f32.gmra.mrb[34].mxu1 %vm2209_vm3, %v6511_v28  ;;  %5607 = vmatmul.mubr.msk.f32.gmra.mrb[34].mxu0 %vm2209_vm3, %v6511_v28  ;;  %v6525_v34 = vmax.f32 %v2350_v29, 0.0 }
 0x38a   : > { %v6523_v32 = vmax.f32 %v2345_v31, 0.0  ;;  %v5550_v33 = vpop.f32.mrb[22].mxu0  ;;  %5997 = vmatpush3.bf16.msra.mxu1 %v5994_v24  ;;  %6005 = vmatpush3.bf16.msra.mxu0 %v6002_v7 }
 0x38b   : > { %v2360_v35 = vadd.f32 %v5550_v33, %v6485_v11  ;;  %v2354_v36 = vpop.f32.mrb[23].mxu0  ;;  %6007 = vmatprep.subr.bf16.mxu1 %v6006_v4 }
 0x38c   : > { %v2355_v37 = vadd.f32 %v6485_v11, %v2354_v36  ;;  %5577 = vmatprep.mubr.msk.f32.mxu1 %vm2209_vm3, %v6523_v32  ;;  %5609 = vmatprep.mubr.msk.f32.mxu0 %vm2209_vm3, %v6523_v32 }
 0x38d   : > { %5578 = vmatmul.mubr.msk.f32.gmra.mrb[36].mxu1 %vm2209_vm3, %v6525_v34  ;;  %5610 = vmatmul.mubr.msk.f32.gmra.mrb[36].mxu0 %vm2209_vm3, %v6525_v34  ;;  %v6539_v40 = vmax.f32 %v2360_v35, 0.0 }
 0x38e   : > { %v6537_v38 = vmax.f32 %v2355_v37, 0.0  ;;  %v5553_v39 = vpop.f32.mrb[24].mxu0  ;;  %v2645_v37 = vld [vmem:[#allocation2 + $0x28] sm:$0xff] }
 0x38f   : > { %v2370_v41 = vadd.f32 %v5553_v39, %v6485_v11  ;;  %v2364_v42 = vpop.f32.mrb[25].mxu0  ;;  %v2644_v39 = vld [vmem:[#allocation2 + $0x20] sm:$0xff] }
 0x390   : > { %v2365_v43 = vadd.f32 %v6485_v11, %v2364_v42  ;;  %5580 = vmatprep.mubr.msk.f32.mxu1 %vm2209_vm3, %v6537_v38  ;;  %5612 = vmatprep.mubr.msk.f32.mxu0 %vm2209_vm3, %v6537_v38 }
 0x391   : > { %5581 = vmatmul.mubr.msk.f32.gmra.mrb[38].mxu1 %vm2209_vm3, %v6539_v40  ;;  %5613 = vmatmul.mubr.msk.f32.gmra.mrb[38].mxu0 %vm2209_vm3, %v6539_v40  ;;  %v6553_v46 = vmax.f32 %v2370_v41, 0.0 }
 0x392   : > { %v6551_v44 = vmax.f32 %v2365_v43, 0.0  ;;  %v5556_v45 = vpop.f32.mrb[26].mxu0  ;;  %v6671_v43 = vld [vmem:[%s7260_s9] ss:$0 sm:$0xff] }
 0x393   : > { %v2380_v47 = vadd.f32 %v5556_v45, %v6485_v11  ;;  %v2374_v48 = vpop.f32.mrb[27].mxu0 }
 0x394   : > { %v2375_v0 = vadd.f32 %v6485_v11, %v2374_v48  ;;  %5583 = vmatprep.mubr.msk.f32.mxu1 %vm2209_vm3, %v6551_v44  ;;  %5615 = vmatprep.mubr.msk.f32.mxu0 %vm2209_vm3, %v6551_v44  ;;  %v2647_v48 = vld [vmem:[#allocation2 + $0x38] sm:$0xff] }
 0x395   : > { %5584 = vmatmul.mubr.msk.f32.gmra.mrb[40].mxu1 %vm2209_vm3, %v6553_v46  ;;  %5616 = vmatmul.mubr.msk.f32.gmra.mrb[40].mxu0 %vm2209_vm3, %v6553_v46  ;;  %v6567_v50 = vmax.f32 %v2380_v47, 0.0 }
 0x396   : > { %v6565_v15 = vmax.f32 %v2375_v0, 0.0  ;;  %v5559_v49 = vpop.f32.mrb[28].mxu0 }
 0x397   : > { %v2390_v51 = vadd.f32 %v5559_v49, %v6485_v11  ;;  %v2384_v52 = vpop.f32.mrb[29].mxu0 }
 0x398   : > { %v2385_v53 = vadd.f32 %v6485_v11, %v2384_v52  ;;  %5586 = vmatprep.mubr.msk.f32.mxu1 %vm2209_vm3, %v6565_v15  ;;  %5618 = vmatprep.mubr.msk.f32.mxu0 %vm2209_vm3, %v6565_v15  ;;  %v3506_v52 = vld [vmem:[%s7299_s30 + $0x10] sm:$0xff] }
 0x399   : > { %5587 = vmatmul.mubr.msk.f32.gmra.mrb[42].mxu1 %vm2209_vm3, %v6567_v50  ;;  %5619 = vmatmul.mubr.msk.f32.gmra.mrb[42].mxu0 %vm2209_vm3, %v6567_v50  ;;  %v6581_v56 = vmax.f32 %v2390_v51, 0.0 }
 0x39a   : > { %v6579_v54 = vmax.f32 %v2385_v53, 0.0  ;;  %v5562_v55 = vpop.f32.mrb[30].mxu0  ;;  %v3507_v53 = vld [vmem:[%s7299_s30 + $0x18] sm:$0xff] }
 0x39b   : > { %v6584_v57 = vadd.f32 %v5562_v55, %v6485_v11  ;;  %v2394_v58 = vpop.f32.mrb[31].mxu0  ;;  %v2646_v55 = vld [vmem:[#allocation2 + $0x30] sm:$0xff]  ;;  %v6018_v6 = vpack.c.bf16 %v3507_v53, %v3506_v52 }
 0x39c   : > { %v6587_v59 = vadd.f32 %v6485_v11, %v2394_v58  ;;  %5589 = vmatprep.mubr.msk.f32.mxu1 %vm2209_vm3, %v6579_v54  ;;  %5621 = vmatprep.mubr.msk.f32.mxu0 %vm2209_vm3, %v6579_v54  ;;  %v3504_v11 = vld [vmem:[%s7299_s30] sm:$0xff] }
 0x39d   : > { %5590 = vmatmul.mubr.msk.f32.gmra.mrb[44].mxu1 %vm2209_vm3, %v6581_v56  ;;  %5622 = vmatmul.mubr.msk.f32.gmra.mrb[44].mxu0 %vm2209_vm3, %v6581_v56  ;;  %v2418_v61 = vmax.f32 %v6584_v57, 0.0  ;;  %v6659_v13 = vpack.c.bf16 %v3505_v12, %v3504_v11  ;;  %v2648_v12 = vld [vmem:[#allocation2 + $0x40] sm:$0xff] }
 0x39e   : > { %v2417_v60 = vmax.f32 %v6587_v59, 0.0 }
 0x3a0   : > { %5592 = vmatprep.mubr.msk.f32.mxu1 %vm2209_vm3, %v2417_v60 }
 0x3a1   : > { %5593 = vmatmul.mubr.msk.f32.gmra.mrb[46].mxu1 %vm2209_vm3, %v2418_v61 }
 0x3a2   : > { %5632 = vmatprep.mubr.msk.f32.mxu1 %vm2209_vm3, %v6495_v19 }
 0x3a5   : > { %5633 = vmatmul.mubr.msk.f32.vlgmr.msra.gmra.mrb[48].mxu1 %vm2209_vm3, %v6497_v21 }
 0x3a6   : > { %5635 = vmatprep.mubr.msk.f32.mxu1 %vm2209_vm3, %v6509_v26  ;;  %6009 = vmatpush3.bf16.msra.mxu1 %v6006_v4 }
 0x3a7   : > { %6011 = vmatprep.subr.bf16.mxu1 %v6010_v10 }
 0x3a9   : > { %5636 = vmatmul.mubr.msk.f32.gmra.mrb[50].mxu1 %vm2209_vm3, %v6511_v28 }
 0x3aa   : > { %5638 = vmatprep.mubr.msk.f32.mxu1 %vm2209_vm3, %v6523_v32  ;;  %6013 = vmatpush3.bf16.msra.mxu1 %v6010_v10 }
 0x3ab   : > { %6015 = vmatprep.subr.bf16.mxu1 %v6659_v13 }
 0x3ad   : > { %5639 = vmatmul.mubr.msk.f32.gmra.mrb[52].mxu1 %vm2209_vm3, %v6525_v34 }
 0x3ae   : > { %5641 = vmatprep.mubr.msk.f32.mxu1 %vm2209_vm3, %v6537_v38 }
 0x3b1   : > { %5642 = vmatmul.mubr.msk.f32.gmra.mrb[54].mxu1 %vm2209_vm3, %v6539_v40 }
 0x3b2   : > { %5644 = vmatprep.mubr.msk.f32.mxu1 %vm2209_vm3, %v6551_v44 }
 0x3b5   : > { %5645 = vmatmul.mubr.msk.f32.gmra.mrb[56].mxu1 %vm2209_vm3, %v6553_v46 }
 0x3b6   : > { %5647 = vmatprep.mubr.msk.f32.mxu1 %vm2209_vm3, %v6565_v15 }
 0x3b9   : > { %5648 = vmatmul.mubr.msk.f32.gmra.mrb[58].mxu1 %vm2209_vm3, %v6567_v50 }
 0x458   : > { %v5573_v17 = vpop.f32.mrb[32].mxu1  ;;  %v5605_v18 = vpop.f32.mrb[32].mxu0 }
 0x459   : > { %v2657_v20 = vadd.f32 %v5573_v17, %v2641_v14  ;;  %v2561_v22 = vpop.f32.mrb[33].mxu1  ;;  %v2759_v23 = vpop.f32.mrb[33].mxu0 }
 0x45a   : > { %v2656_v24 = vadd.f32 %v2640_v16, %v2561_v22 }
 0x45b   : > { %2673 = vst.msk [vmem:[#allocation2 + $0x8] sm:$0xff] %vm2209_vm3, %v2657_v20 }
 0x45c   : > { %2672 = vst.msk [vmem:[#allocation2] sm:$0xff] %vm2209_vm3, %v2656_v24  ;;  %v5576_v29 = vpop.f32.mrb[34].mxu1  ;;  %v5608_v30 = vpop.f32.mrb[34].mxu0 }
 0x45d   : > { %v2659_v31 = vadd.f32 %v5576_v29, %v2643_v25  ;;  %v2571_v33 = vpop.f32.mrb[35].mxu1  ;;  %v2769_v35 = vpop.f32.mrb[35].mxu0 }
 0x45e   : > { %v2658_v36 = vadd.f32 %v2642_v27, %v2571_v33  ;;  %v2651_v27 = vld [vmem:[#allocation2 + $0x58] sm:$0xff] }
 0x45f   : > { %2675 = vst.msk [vmem:[#allocation2 + $0x18] sm:$0xff] %vm2209_vm3, %v2659_v31  ;;  %v2650_v31 = vld [vmem:[#allocation2 + $0x50] sm:$0xff] }
 0x460   : > { %2674 = vst.msk [vmem:[#allocation2 + $0x10] sm:$0xff] %vm2209_vm3, %v2658_v36  ;;  %v5579_v41 = vpop.f32.mrb[36].mxu1  ;;  %v6666_v42 = vpop.f32.mrb[36].mxu0 }
 0x461   : > { %v2661_v45 = vadd.f32 %v5579_v41, %v2645_v37  ;;  %v2581_v47 = vpop.f32.mrb[37].mxu1  ;;  %v6673_v0 = vpop.f32.mrb[37].mxu0 }
 0x462   : > { %v2660_v49 = vadd.f32 %v2644_v39, %v2581_v47  ;;  %v3038_v51 = vld [vmem:[#allocation2 + $0x8] sm:$0xff] }
 0x463   : > { %2677 = vst.msk [vmem:[#allocation2 + $0x28] sm:$0xff] %vm2209_vm3, %v2661_v45  ;;  %v3037_v58 = vld [vmem:[#allocation2] sm:$0xff]  ;;  %3077 = vst.msk [vmem:[#allocation2 + $0x8] sm:$0xff] %vm2209_vm3, %v6671_v43  ;;  %v6691_v4 = vmax.f32 %v3038_v51, 0.0  ;;  %v2653_v47 = vld [vmem:[#allocation2 + $0x68] sm:$0xff] }
 0x464   : > { %2676 = vst.msk [vmem:[#allocation2 + $0x20] sm:$0xff] %vm2209_vm3, %v2660_v49  ;;  %v5582_v62 = vpop.f32.mrb[38].mxu1  ;;  %v6685_v63 = vmax.f32 %v3037_v58, 0.0  ;;  %v6687_v1 = vpop.f32.mrb[38].mxu0  ;;  %3076 = vst.msk [vmem:[#allocation2] sm:$0xff] %vm2209_vm3, %v6671_v43 }
 0x465   : > { %v2663_v2 = vadd.f32 %v5582_v62, %v2647_v48  ;;  %v2591_v3 = vpop.f32.mrb[39].mxu1  ;;  %v6693_v5 = vpop.f32.mrb[39].mxu0 }
 0x466   : > { %v2830_v7 = vld [vmem:[#allocation2 + $0x18] sm:$0xff]  ;;  %v2662_v8 = vadd.f32 %v2646_v55, %v2591_v3  ;;  %5658 = vmatprep.mubr.msk.f32.mxu0 %vm2209_vm3, %v6685_v63  ;;  %5690 = vmatprep.mubr.msk.f32.mxu1 %vm2209_vm3, %v6685_v63 }
 0x467   : > { %v2844_v10 = vadd.f32 %v5605_v18, %v2830_v7  ;;  %v2829_v11 = vld [vmem:[#allocation2 + $0x10] sm:$0xff]  ;;  %2679 = vst.msk [vmem:[#allocation2 + $0x38] sm:$0xff] %vm2209_vm3, %v2663_v2  ;;  %5659 = vmatmul.mubr.msk.f32.vlgmr.msra.gmra.mrb[46].mxu0 %vm2209_vm3, %v6691_v4  ;;  %5691 = vmatmul.mubr.msk.f32.vlgmr.msra.gmra.mrb[60].mxu1 %vm2209_vm3, %v6691_v4  ;;  %v2655_v7 = vld [vmem:[#allocation2 + $0x78] sm:$0xff] }
 0x468   : > { %v2843_v14 = vadd.f32 %v2829_v11, %v2759_v23  ;;  %2678 = vst.msk [vmem:[#allocation2 + $0x30] sm:$0xff] %vm2209_vm3, %v2662_v8  ;;  %v5585_v16 = vpop.f32.mrb[40].mxu1  ;;  %v6705_v17 = vpop.f32.mrb[40].mxu0  ;;  %6017 = vmatpush3.bf16.msra.mxu1 %v6659_v13 }
 0x469   : > { %2858 = vst.msk [vmem:[#allocation2 + $0x18] sm:$0xff] %vm2209_vm3, %v2844_v10  ;;  %v2665_v18 = vadd.f32 %v5585_v16, %v2649_v9  ;;  %v2601_v20 = vpop.f32.mrb[41].mxu1  ;;  %v6709_v22 = vpop.f32.mrb[41].mxu0  ;;  %6019 = vmatprep.subr.bf16.mxu1 %v6018_v6  ;;  %v2654_v10 = vld [vmem:[#allocation2 + $0x70] sm:$0xff] }
 0x46a   : > { %2857 = vst.msk [vmem:[#allocation2 + $0x10] sm:$0xff] %vm2209_vm3, %v2843_v14  ;;  %v2832_v24 = vld [vmem:[#allocation2 + $0x28] sm:$0xff]  ;;  %v2664_v25 = vadd.f32 %v2648_v12, %v2601_v20 }
 0x46b   : > { %v2846_v23 = vadd.f32 %v5608_v30, %v2832_v24  ;;  %v2831_v29 = vld [vmem:[#allocation2 + $0x20] sm:$0xff]  ;;  %2681 = vst.msk [vmem:[#allocation2 + $0x48] sm:$0xff] %vm2209_vm3, %v2665_v18 }
 0x46c   : > { %v2845_v33 = vadd.f32 %v2831_v29, %v2769_v35  ;;  %2680 = vst.msk [vmem:[#allocation2 + $0x40] sm:$0xff] %vm2209_vm3, %v2664_v25  ;;  %v5588_v13 = vpop.f32.mrb[42].mxu1  ;;  %v6714_v36 = vpop.f32.mrb[42].mxu0  ;;  %6021 = vmatpush3.bf16.msra.mxu1 %v6018_v6  ;;  %v2652_v35 = vld [vmem:[#allocation2 + $0x60] sm:$0xff] }
 0x46d   : > { %2860 = vst.msk [vmem:[#allocation2 + $0x28] sm:$0xff] %vm2209_vm3, %v2846_v23  ;;  %v2667_v37 = vadd.f32 %v5588_v13, %v2651_v27  ;;  %v2611_v39 = vpop.f32.mrb[43].mxu1  ;;  %v2809_v41 = vpop.f32.mrb[43].mxu0 }
 0x46e   : > { %2859 = vst.msk [vmem:[#allocation2 + $0x20] sm:$0xff] %vm2209_vm3, %v2845_v33  ;;  %v2834_v45 = vld [vmem:[#allocation2 + $0x38] sm:$0xff]  ;;  %v2666_v30 = vadd.f32 %v2650_v31, %v2611_v39 }
 0x46f   : > { %v2848_v48 = vadd.f32 %v6666_v42, %v2834_v45  ;;  %v2833_v49 = vld [vmem:[#allocation2 + $0x30] sm:$0xff]  ;;  %2683 = vst.msk [vmem:[#allocation2 + $0x58] sm:$0xff] %vm2209_vm3, %v2667_v37 }
 0x470   : > { %v2847_v51 = vadd.f32 %v2833_v49, %v6673_v0  ;;  %2682 = vst.msk [vmem:[#allocation2 + $0x50] sm:$0xff] %vm2209_vm3, %v2666_v30  ;;  %v5591_v52 = vpop.f32.mrb[44].mxu1  ;;  %v3040_v53 = vld [vmem:[#allocation2 + $0x18] sm:$0xff]  ;;  %v5623_v55 = vpop.f32.mrb[44].mxu0 }
 0x471   : > { %2862 = vst.msk [vmem:[#allocation2 + $0x38] sm:$0xff] %vm2209_vm3, %v2848_v48  ;;  %v2669_v58 = vadd.f32 %v5591_v52, %v2653_v47  ;;  %v2621_v62 = vpop.f32.mrb[45].mxu1  ;;  %v3039_v2 = vld [vmem:[#allocation2 + $0x10] sm:$0xff]  ;;  %v2819_v3 = vpop.f32.mrb[45].mxu0  ;;  %3079 = vst.msk [vmem:[#allocation2 + $0x18] sm:$0xff] %vm2209_vm3, %v6671_v43  ;;  %v6732_v11 = vmax.f32 %v3040_v53, 0.0 }
 0x472   : > { %2861 = vst.msk [vmem:[#allocation2 + $0x30] sm:$0xff] %vm2209_vm3, %v2847_v51  ;;  %v2836_v42 = vld [vmem:[#allocation2 + $0x48] sm:$0xff]  ;;  %v2668_v6 = vadd.f32 %v2652_v35, %v2621_v62  ;;  %v6726_v0 = vmax.f32 %v3039_v2, 0.0  ;;  %3078 = vst.msk [vmem:[#allocation2 + $0x10] sm:$0xff] %vm2209_vm3, %v6671_v43 }
 0x473   : > { %v2850_v8 = vadd.f32 %v6687_v1, %v2836_v42  ;;  %v2835_v9 = vld [vmem:[#allocation2 + $0x40] sm:$0xff]  ;;  %2685 = vst.msk [vmem:[#allocation2 + $0x68] sm:$0xff] %vm2209_vm3, %v2669_v58 }
 0x474   : > { %v2849_v12 = vadd.f32 %v2835_v9, %v6693_v5  ;;  %2684 = vst.msk [vmem:[#allocation2 + $0x60] sm:$0xff] %vm2209_vm3, %v2668_v6  ;;  %v5594_v14 = vpop.f32.mrb[46].mxu1  ;;  %5661 = vmatprep.mubr.msk.f32.mxu0 %vm2209_vm3, %v6726_v0  ;;  %5693 = vmatprep.mubr.msk.f32.mxu1 %vm2209_vm3, %v6726_v0  ;;  %v3002_v23 = vld [vmem:[#allocation2 + $0x28] sm:$0xff] }
 0x475   : > { %2864 = vst.msk [vmem:[#allocation2 + $0x48] sm:$0xff] %vm2209_vm3, %v2850_v8  ;;  %v2671_v1 = vadd.f32 %v5594_v14, %v2655_v7  ;;  %v2631_v16 = vpop.f32.mrb[47].mxu1  ;;  %5662 = vmatmul.mubr.msk.f32.gmra.mrb[48].mxu0 %vm2209_vm3, %v6732_v11  ;;  %5694 = vmatmul.mubr.msk.f32.gmra.mrb[62].mxu1 %vm2209_vm3, %v6732_v11  ;;  %v3001_v33 = vld [vmem:[#allocation2 + $0x20] sm:$0xff] }
 0x476   : > { %2863 = vst.msk [vmem:[#allocation2 + $0x40] sm:$0xff] %vm2209_vm3, %v2849_v12  ;;  %v2838_v5 = vld [vmem:[#allocation2 + $0x58] sm:$0xff]  ;;  %v2670_v18 = vadd.f32 %v2654_v10, %v2631_v16 }
 0x477   : > { %v2852_v20 = vadd.f32 %v6705_v17, %v2838_v5  ;;  %v2837_v24 = vld [vmem:[#allocation2 + $0x50] sm:$0xff]  ;;  %2687 = vst.msk [vmem:[#allocation2 + $0x78] sm:$0xff] %vm2209_vm3, %v2671_v1 }
 0x478   : > { %v2851_v25 = vadd.f32 %v2837_v24, %v6709_v22  ;;  %2686 = vst.msk [vmem:[#allocation2 + $0x70] sm:$0xff] %vm2209_vm3, %v2670_v18  ;;  %v5634_v27 = vpop.f32.mrb[48].mxu1  ;;  %v3004_v30 = vld [vmem:[#allocation2 + $0x38] sm:$0xff] }
 0x479   : > { %2866 = vst.msk [vmem:[#allocation2 + $0x58] sm:$0xff] %vm2209_vm3, %v2852_v20  ;;  %v3014_v29 = vadd.f32 %v5634_v27, %v3002_v23  ;;  %v2941_v31 = vpop.f32.mrb[49].mxu1  ;;  %v3003_v49 = vld [vmem:[#allocation2 + $0x30] sm:$0xff] }
 0x47a   : > { %2865 = vst.msk [vmem:[#allocation2 + $0x50] sm:$0xff] %vm2209_vm3, %v2851_v25  ;;  %v2840_v13 = vld [vmem:[#allocation2 + $0x68] sm:$0xff]  ;;  %v3013_v37 = vadd.f32 %v3001_v33, %v2941_v31 }
 0x47b   : > { %v2854_v17 = vadd.f32 %v6714_v36, %v2840_v13  ;;  %v2839_v39 = vld [vmem:[#allocation2 + $0x60] sm:$0xff]  ;;  %3026 = vst.msk [vmem:[#allocation2 + $0x28] sm:$0xff] %vm2209_vm3, %v3014_v29 }
 0x47c   : > { %v2853_v45 = vadd.f32 %v2839_v39, %v2809_v41  ;;  %3025 = vst.msk [vmem:[#allocation2 + $0x20] sm:$0xff] %vm2209_vm3, %v3013_v37  ;;  %v5637_v22 = vpop.f32.mrb[50].mxu1  ;;  %v3006_v58 = vld [vmem:[#allocation2 + $0x48] sm:$0xff] }
 0x47d   : > { %2868 = vst.msk [vmem:[#allocation2 + $0x68] sm:$0xff] %vm2209_vm3, %v2854_v17  ;;  %v3016_v47 = vadd.f32 %v5637_v22, %v3004_v30  ;;  %v2951_v48 = vpop.f32.mrb[51].mxu1  ;;  %v3005_v42 = vld [vmem:[#allocation2 + $0x40] sm:$0xff] }
 0x47e   : > { %2867 = vst.msk [vmem:[#allocation2 + $0x60] sm:$0xff] %vm2209_vm3, %v2853_v45  ;;  %v2842_v35 = vld [vmem:[#allocation2 + $0x78] sm:$0xff]  ;;  %v3015_v51 = vadd.f32 %v3003_v49, %v2951_v48 }
 0x47f   : > { %v2856_v52 = vadd.f32 %v5623_v55, %v2842_v35  ;;  %v2841_v53 = vld [vmem:[#allocation2 + $0x70] sm:$0xff]  ;;  %3028 = vst.msk [vmem:[#allocation2 + $0x38] sm:$0xff] %vm2209_vm3, %v3016_v47 }
 0x480   : > { %v2855_v36 = vadd.f32 %v2841_v53, %v2819_v3  ;;  %3027 = vst.msk [vmem:[#allocation2 + $0x30] sm:$0xff] %vm2209_vm3, %v3015_v51  ;;  %v5640_v41 = vpop.f32.mrb[52].mxu1  ;;  %v3008_v8 = vld [vmem:[#allocation2 + $0x58] sm:$0xff] }
 0x481   : > { %2870 = vst.msk [vmem:[#allocation2 + $0x78] sm:$0xff] %vm2209_vm3, %v2856_v52  ;;  %v3018_v62 = vadd.f32 %v5640_v41, %v3006_v58  ;;  %v2961_v2 = vpop.f32.mrb[53].mxu1  ;;  %v3007_v14 = vld [vmem:[#allocation2 + $0x50] sm:$0xff] }
 0x482   : > { %2869 = vst.msk [vmem:[#allocation2 + $0x70] sm:$0xff] %vm2209_vm3, %v2855_v36  ;;  %v3017_v6 = vadd.f32 %v3005_v42, %v2961_v2  ;;  %v3042_v7 = vld [vmem:[#allocation2 + $0x28] sm:$0xff] }
 0x483   : > { %3030 = vst.msk [vmem:[#allocation2 + $0x48] sm:$0xff] %vm2209_vm3, %v3018_v62  ;;  %v3041_v55 = vld [vmem:[#allocation2 + $0x20] sm:$0xff]  ;;  %3081 = vst.msk [vmem:[#allocation2 + $0x28] sm:$0xff] %vm2209_vm3, %v6671_v43  ;;  %v6769_v1 = vmax.f32 %v3042_v7, 0.0  ;;  %v3677_v7 = vld [vmem:[%s7262_s11 + $0x18] sm:$0xff] }
 0x484   : > { %3029 = vst.msk [vmem:[#allocation2 + $0x40] sm:$0xff] %vm2209_vm3, %v3017_v6  ;;  %v5643_v3 = vpop.f32.mrb[54].mxu1  ;;  %v6765_v9 = vmax.f32 %v3041_v55, 0.0  ;;  %3080 = vst.msk [vmem:[#allocation2 + $0x20] sm:$0xff] %vm2209_vm3, %v6671_v43  ;;  %v3010_v24 = vld [vmem:[#allocation2 + $0x68] sm:$0xff] }
 0x485   : > { %v3020_v10 = vadd.f32 %v5643_v3, %v3008_v8  ;;  %v2971_v12 = vpop.f32.mrb[55].mxu1  ;;  %v3009_v29 = vld [vmem:[#allocation2 + $0x60] sm:$0xff]  ;;  %v3671_v8 = vld [vmem:[%s7261_s10 + $0x8] sm:$0xff] }
 0x486   : > { %v3019_v16 = vadd.f32 %v3007_v14, %v2971_v12  ;;  %5664 = vmatprep.mubr.msk.f32.mxu0 %vm2209_vm3, %v6765_v9  ;;  %5696 = vmatprep.mubr.msk.f32.mxu1 %vm2209_vm3, %v6765_v9  ;;  %v3044_v5 = vld [vmem:[#allocation2 + $0x38] sm:$0xff]  ;;  %v3670_v3 = vld [vmem:[%s7261_s10] sm:$0xff]  ;;  %v6131_v14 = vmov 0  }
 0x487   : > { %3032 = vst.msk [vmem:[#allocation2 + $0x58] sm:$0xff] %vm2209_vm3, %v3020_v10  ;;  %5665 = vmatmul.mubr.msk.f32.gmra.mrb[50].mxu0 %vm2209_vm3, %v6769_v1  ;;  %5697 = vmatmul.mubr.msk.f32.gmra.mrb[64].mxu1 %vm2209_vm3, %v6769_v1  ;;  %v3043_v18 = vld [vmem:[#allocation2 + $0x30] sm:$0xff]  ;;  %3083 = vst.msk [vmem:[#allocation2 + $0x38] sm:$0xff] %vm2209_vm3, %v6671_v43  ;;  %v3060_v31 = vmax.f32 %v3044_v5, 0.0  ;;  %v4039_v10 = vld [vmem:[%s7264_s13] sm:$0xff] }
 0x488   : > { %3031 = vst.msk [vmem:[#allocation2 + $0x50] sm:$0xff] %vm2209_vm3, %v3019_v16  ;;  %v5646_v20 = vpop.f32.mrb[56].mxu1  ;;  %v6783_v25 = vmax.f32 %v3043_v18, 0.0  ;;  %3082 = vst.msk [vmem:[#allocation2 + $0x30] sm:$0xff] %vm2209_vm3, %v6671_v43  ;;  %v3012_v39 = vld [vmem:[#allocation2 + $0x78] sm:$0xff]  ;;  %v4041_v12 = vld [vmem:[%s7265_s14] sm:$0xff]  ;;  %6121 = vset.pattern.permute.xlu0 %v6131_v14  ;;  %6122 = vset.pattern.permute.xlu1 %v6131_v14 }
 0x489   : > { %v3022_v27 = vadd.f32 %v5646_v20, %v3010_v24  ;;  %v2981_v23 = vpop.f32.mrb[57].mxu1  ;;  %v3011_v47 = vld [vmem:[#allocation2 + $0x70] sm:$0xff]  ;;  %4045 = vperm.xlu0 %6121, %v4039_v10   ;;  %4071 = vperm.xlu1 %6122, %v4041_v12   ;;  %v4042_v16 = vld [vmem:[%s7265_s14 + $0x8] sm:$0xff]  ;;  %v3290_v18 = vld [vmem:[#allocation2] sm:$0xff] }
 0x48a   : > { %v3021_v33 = vadd.f32 %v3009_v29, %v2981_v23  ;;  %5667 = vmatprep.mubr.msk.f32.mxu0 %vm2209_vm3, %v6783_v25  ;;  %5699 = vmatprep.mubr.msk.f32.mxu1 %vm2209_vm3, %v6783_v25  ;;  %v3046_v13 = vld [vmem:[#allocation2 + $0x48] sm:$0xff] }
 0x48b   : > { %3034 = vst.msk [vmem:[#allocation2 + $0x68] sm:$0xff] %vm2209_vm3, %v3022_v27  ;;  %5668 = vmatmul.mubr.msk.f32.gmra.mrb[52].mxu0 %vm2209_vm3, %v3060_v31  ;;  %5700 = vmatmul.mubr.msk.f32.gmra.mrb[66].mxu1 %vm2209_vm3, %v3060_v31  ;;  %v3045_v37 = vld [vmem:[#allocation2 + $0x40] sm:$0xff]  ;;  %3085 = vst.msk [vmem:[#allocation2 + $0x48] sm:$0xff] %vm2209_vm3, %v6671_v43  ;;  %v3062_v48 = vmax.f32 %v3046_v13, 0.0  ;;  %v3291_v5 = vld [vmem:[#allocation2 + $0x8] sm:$0xff] }
 0x48c   : > { %3033 = vst.msk [vmem:[#allocation2 + $0x60] sm:$0xff] %vm2209_vm3, %v3021_v33  ;;  %v5649_v17 = vpop.f32.mrb[58].mxu1  ;;  %v3061_v45 = vmax.f32 %v3045_v37, 0.0  ;;  %3084 = vst.msk [vmem:[#allocation2 + $0x40] sm:$0xff] %vm2209_vm3, %v6671_v43  ;;  %v3672_v33 = vld [vmem:[%s7261_s10 + $0x10] sm:$0xff]  ;;  %v3673_v13 = vld [vmem:[%s7261_s10 + $0x18] sm:$0xff] }
 0x48d   : > { %v3024_v22 = vadd.f32 %v5649_v17, %v3012_v39  ;;  %v2991_v30 = vpop.f32.mrb[59].mxu1  ;;  %4076 = vperm.xlu1 %6122, %v4042_v16   ;;  %v3293_v17 = vld [vmem:[#allocation2 + $0x18] sm:$0xff] }
 0x48e   : > { %v3023_v49 = vadd.f32 %v3011_v47, %v2991_v30  ;;  %5670 = vmatprep.mubr.msk.f32.mxu0 %vm2209_vm3, %v3061_v45  ;;  %5702 = vmatprep.mubr.msk.f32.mxu1 %vm2209_vm3, %v3061_v45  ;;  %v3048_v35 = vld [vmem:[#allocation2 + $0x58] sm:$0xff]  ;;  %v3292_v45 = vld [vmem:[#allocation2 + $0x10] sm:$0xff]  ;;  %v6034_v30 = vpack.c.bf16 %v3673_v13, %v3672_v33 }
 0x48f   : > { %3036 = vst.msk [vmem:[#allocation2 + $0x78] sm:$0xff] %vm2209_vm3, %v3024_v22  ;;  %5671 = vmatmul.mubr.msk.f32.gmra.mrb[54].mxu0 %vm2209_vm3, %v3062_v48  ;;  %5703 = vmatmul.mubr.msk.f32.gmra.mrb[68].mxu1 %vm2209_vm3, %v3062_v48  ;;  %v3047_v51 = vld [vmem:[#allocation2 + $0x50] sm:$0xff]  ;;  %3087 = vst.msk [vmem:[#allocation2 + $0x58] sm:$0xff] %vm2209_vm3, %v6671_v43  ;;  %v3064_v53 = vmax.f32 %v3048_v35, 0.0 }
 0x490   : > { %3035 = vst.msk [vmem:[#allocation2 + $0x70] sm:$0xff] %vm2209_vm3, %v3023_v49  ;;  %v3063_v52 = vmax.f32 %v3047_v51, 0.0  ;;  %3086 = vst.msk [vmem:[#allocation2 + $0x50] sm:$0xff] %vm2209_vm3, %v6671_v43 }
 0x492   : > { %5673 = vmatprep.mubr.msk.f32.mxu0 %vm2209_vm3, %v3063_v52  ;;  %5705 = vmatprep.mubr.msk.f32.mxu1 %vm2209_vm3, %v3063_v52  ;;  %v3050_v36 = vld [vmem:[#allocation2 + $0x68] sm:$0xff] }
 0x493   : > { %5674 = vmatmul.mubr.msk.f32.gmra.mrb[56].mxu0 %vm2209_vm3, %v3064_v53  ;;  %5706 = vmatmul.mubr.msk.f32.gmra.mrb[70].mxu1 %vm2209_vm3, %v3064_v53  ;;  %v3049_v41 = vld [vmem:[#allocation2 + $0x60] sm:$0xff]  ;;  %3089 = vst.msk [vmem:[#allocation2 + $0x68] sm:$0xff] %vm2209_vm3, %v6671_v43  ;;  %v3066_v62 = vmax.f32 %v3050_v36, 0.0  ;;  %v3299_v14 = vld [vmem:[#allocation2 + $0x48] sm:$0xff] }
 0x494   : > { %5716 = vmatprep.mubr.msk.f32.mxu1 %vm2209_vm3, %v6685_v63  ;;  %v3065_v58 = vmax.f32 %v3049_v41, 0.0  ;;  %3088 = vst.msk [vmem:[#allocation2 + $0x60] sm:$0xff] %vm2209_vm3, %v6671_v43 }
 0x496   : > { %5676 = vmatprep.mubr.msk.f32.mxu0 %vm2209_vm3, %v3065_v58  ;;  %v3052_v2 = vld [vmem:[#allocation2 + $0x78] sm:$0xff] }
 0x497   : > { %5677 = vmatmul.mubr.msk.f32.gmra.mrb[58].mxu0 %vm2209_vm3, %v3066_v62  ;;  %5717 = vmatmul.mubr.msk.f32.vlgmr.msra.gmra.mrb[72].mxu1 %vm2209_vm3, %v6691_v4  ;;  %v3051_v42 = vld [vmem:[#allocation2 + $0x70] sm:$0xff]  ;;  %3091 = vst.msk [vmem:[#allocation2 + $0x78] sm:$0xff] %vm2209_vm3, %v6671_v43  ;;  %v3068_v6 = vmax.f32 %v3052_v2, 0.0  ;;  %v3675_v4 = vld [vmem:[%s7262_s11 + $0x8] sm:$0xff]  ;;  %v3294_v2 = vld [vmem:[#allocation2 + $0x20] sm:$0xff] }
 0x498   : > { %5719 = vmatprep.mubr.msk.f32.mxu1 %vm2209_vm3, %v6726_v0  ;;  %v3067_v63 = vmax.f32 %v3051_v42, 0.0  ;;  %3090 = vst.msk [vmem:[#allocation2 + $0x70] sm:$0xff] %vm2209_vm3, %v6671_v43  ;;  %v3674_v43 = vld [vmem:[%s7262_s11] sm:$0xff]  ;;  %v3295_v62 = vld [vmem:[#allocation2 + $0x28] sm:$0xff] }
 0x499   : > { %v6022_v0 = vpack.c.bf16 %v3675_v4, %v3674_v43 }
 0x49a   : > { %5679 = vmatprep.mubr.msk.f32.mxu0 %vm2209_vm3, %v3067_v63 }
 0x49b   : > { %5680 = vmatmul.mubr.msk.f32.gmra.mrb[60].mxu0 %vm2209_vm3, %v3068_v6  ;;  %5720 = vmatmul.mubr.msk.f32.gmra.mrb[74].mxu1 %vm2209_vm3, %v6732_v11  ;;  %v3676_v11 = vld [vmem:[%s7262_s11 + $0x10] sm:$0xff] }
 0x49c   : > { %5722 = vmatprep.mubr.msk.f32.mxu1 %vm2209_vm3, %v6765_v9  ;;  %6023 = vmatprep.subr.bf16.mxu0 %v6022_v0  ;;  %v6026_v55 = vpack.c.bf16 %v3677_v7, %v3676_v11  ;;  %v6030_v9 = vpack.c.bf16 %v3671_v8, %v3670_v3  ;;  %v3297_v11 = vld [vmem:[#allocation2 + $0x38] sm:$0xff]  ;;  %v3296_v7 = vld [vmem:[#allocation2 + $0x30] sm:$0xff] }
 0x49d   : > { %6025 = vmatpush3.bf16.msra.mxu0 %v6022_v0 }
 0x49e   : > { %6027 = vmatprep.subr.bf16.mxu0 %v6026_v55 }
 0x49f   : > { %5723 = vmatmul.mubr.msk.f32.gmra.mrb[76].mxu1 %vm2209_vm3, %v6769_v1  ;;  %v4040_v1 = vld [vmem:[%s7264_s13 + $0x8] sm:$0xff] }
 0x4a0   : > { %5725 = vmatprep.mubr.msk.f32.mxu1 %vm2209_vm3, %v6783_v25  ;;  %4050 = vperm.xlu0 %6121, %v4040_v1   ;;  %v3298_v1 = vld [vmem:[#allocation2 + $0x40] sm:$0xff] }
 0x4a1   : > { %6029 = vmatpush3.bf16.msra.mxu0 %v6026_v55 }
 0x4a2   : > { %6031 = vmatprep.subr.bf16.mxu0 %v6030_v9 }
 0x4a3   : > { %5726 = vmatmul.mubr.msk.f32.gmra.mrb[78].mxu1 %vm2209_vm3, %v3060_v31 }
 0x508   : > { %v7022_v59 = vpop.permute.xlu0 %4045 }
 0x53a   : > { %v5660_v20 = vpop.f32.mrb[46].mxu0  ;;  %v6870_v24 = vpop.f32.mrb[60].mxu1 }
 0x53b   : > { %v3307_v25 = vadd.f32 %v5660_v20, %v3291_v5  ;;  %v3211_v27 = vpop.f32.mrb[47].mxu0  ;;  %v6872_v23 = vpop.f32.mrb[61].mxu1 }
 0x53c   : > { %v3306_v29 = vadd.f32 %v3290_v18, %v3211_v27 }
 0x53d   : > { %3323 = vst.msk [vmem:[#allocation2 + $0x8] sm:$0xff] %vm2209_vm3, %v3307_v25 }
 0x53e   : > { %3322 = vst.msk [vmem:[#allocation2] sm:$0xff] %vm2209_vm3, %v3306_v29 }
 0x544   : > { %v3639_v31 = vld [vmem:[#allocation2 + $0x8] sm:$0xff] }
 0x545   : > { %v3638_v37 = vld [vmem:[#allocation2] sm:$0xff]  ;;  %v3655_v22 = vmax.f32 %v3639_v31, 0.0  ;;  %v3301_v31 = vld [vmem:[#allocation2 + $0x58] sm:$0xff] }
 0x546   : > { %v3654_v39 = vmax.f32 %v3638_v37, 0.0  ;;  %v3300_v37 = vld [vmem:[#allocation2 + $0x50] sm:$0xff] }
 0x548   : > { %v5663_v47 = vpop.f32.mrb[48].mxu0  ;;  %v6882_v48 = vpop.f32.mrb[62].mxu1  ;;  %5736 = vmatprep.mubr.msk.f32.mxu0 %vm2209_vm3, %v3654_v39 }
 0x549   : > { %v3309_v49 = vadd.f32 %v5663_v47, %v3293_v17  ;;  %v3221_v35 = vpop.f32.mrb[49].mxu0  ;;  %v6885_v51 = vpop.f32.mrb[63].mxu1  ;;  %5737 = vmatmul.mubr.msk.f32.vlgmr.msra.gmra.mrb[62].mxu0 %vm2209_vm3, %v3655_v22 }
 0x54a   : > { %v3308_v52 = vadd.f32 %v3292_v45, %v3221_v35  ;;  %6033 = vmatpush3.bf16.msra.mxu0 %v6030_v9  ;;  %v3303_v35 = vld [vmem:[#allocation2 + $0x68] sm:$0xff] }
 0x54b   : > { %3325 = vst.msk [vmem:[#allocation2 + $0x18] sm:$0xff] %vm2209_vm3, %v3309_v49  ;;  %6035 = vmatprep.subr.bf16.mxu0 %v6034_v30 }
 0x54c   : > { %3324 = vst.msk [vmem:[#allocation2 + $0x10] sm:$0xff] %vm2209_vm3, %v3308_v52 }
 0x54e   : > { %6037 = vmatpush3.bf16.msra.mxu0 %v6034_v30 }
 0x552   : > { %v3641_v53 = vld [vmem:[#allocation2 + $0x18] sm:$0xff] }
 0x553   : > { %v3640_v36 = vld [vmem:[#allocation2 + $0x10] sm:$0xff]  ;;  %v3657_v58 = vmax.f32 %v3641_v53, 0.0 }
 0x554   : > { %v3656_v41 = vmax.f32 %v3640_v36, 0.0 }
 0x556   : > { %5739 = vmatprep.mubr.msk.f32.mxu0 %vm2209_vm3, %v3656_v41 }
 0x557   : > { %5740 = vmatmul.mubr.msk.f32.gmra.mrb[64].mxu0 %vm2209_vm3, %v3657_v58 }
 0x55a   : > { %v5666_v42 = vpop.f32.mrb[50].mxu0  ;;  %v5698_v63 = vpop.f32.mrb[64].mxu1 }
 0x55b   : > { %v3311_v6 = vadd.f32 %v5666_v42, %v3295_v62  ;;  %v3231_v43 = vpop.f32.mrb[51].mxu0  ;;  %v3429_v4 = vpop.f32.mrb[65].mxu1 }
 0x55c   : > { %v3310_v0 = vadd.f32 %v3294_v2, %v3231_v43 }
 0x55d   : > { %3327 = vst.msk [vmem:[#allocation2 + $0x28] sm:$0xff] %vm2209_vm3, %v3311_v6 }
 0x55e   : > { %3326 = vst.msk [vmem:[#allocation2 + $0x20] sm:$0xff] %vm2209_vm3, %v3310_v0  ;;  %v5669_v55 = vpop.f32.mrb[52].mxu0  ;;  %v6894_v3 = vpop.f32.mrb[66].mxu1 }
 0x55f   : > { %v3313_v8 = vadd.f32 %v5669_v55, %v3297_v11  ;;  %v3241_v9 = vpop.f32.mrb[53].mxu0  ;;  %v6896_v10 = vpop.f32.mrb[67].mxu1 }
 0x560   : > { %v3312_v12 = vadd.f32 %v3296_v7, %v3241_v9  ;;  %v3304_v7 = vld [vmem:[#allocation2 + $0x70] sm:$0xff] }
 0x561   : > { %3329 = vst.msk [vmem:[#allocation2 + $0x38] sm:$0xff] %vm2209_vm3, %v3313_v8 }
 0x562   : > { %3328 = vst.msk [vmem:[#allocation2 + $0x30] sm:$0xff] %vm2209_vm3, %v3312_v12  ;;  %v5672_v16 = vpop.f32.mrb[54].mxu0  ;;  %v6900_v5 = vpop.f32.mrb[68].mxu1 }
 0x563   : > { %v3315_v18 = vadd.f32 %v5672_v16, %v3299_v14  ;;  %v3251_v20 = vpop.f32.mrb[55].mxu0  ;;  %v6902_v25 = vpop.f32.mrb[69].mxu1 }
 0x564   : > { %v3469_v27 = vld [vmem:[#allocation2 + $0x28] sm:$0xff]  ;;  %v3314_v29 = vadd.f32 %v3298_v1, %v3251_v20 }
 0x565   : > { %v3481_v33 = vadd.f32 %v6870_v24, %v3469_v27  ;;  %v3468_v13 = vld [vmem:[#allocation2 + $0x20] sm:$0xff]  ;;  %3331 = vst.msk [vmem:[#allocation2 + $0x48] sm:$0xff] %vm2209_vm3, %v3315_v18 }
 0x566   : > { %v3480_v17 = vadd.f32 %v3468_v13, %v6872_v23  ;;  %3330 = vst.msk [vmem:[#allocation2 + $0x40] sm:$0xff] %vm2209_vm3, %v3314_v29  ;;  %v5675_v39 = vpop.f32.mrb[56].mxu0  ;;  %v6908_v45 = vpop.f32.mrb[70].mxu1  ;;  %v3302_v23 = vld [vmem:[#allocation2 + $0x60] sm:$0xff] }
 0x567   : > { %3493 = vst.msk [vmem:[#allocation2 + $0x28] sm:$0xff] %vm2209_vm3, %v3481_v33  ;;  %v3317_v22 = vadd.f32 %v5675_v39, %v3301_v31  ;;  %v3261_v30 = vpop.f32.mrb[57].mxu0  ;;  %v6911_v47 = vpop.f32.mrb[71].mxu1 }
 0x568   : > { %3492 = vst.msk [vmem:[#allocation2 + $0x20] sm:$0xff] %vm2209_vm3, %v3480_v17  ;;  %v3471_v24 = vld [vmem:[#allocation2 + $0x38] sm:$0xff]  ;;  %v3316_v49 = vadd.f32 %v3300_v37, %v3261_v30 }
 0x569   : > { %v3483_v52 = vadd.f32 %v6882_v48, %v3471_v24  ;;  %v3470_v53 = vld [vmem:[#allocation2 + $0x30] sm:$0xff]  ;;  %3333 = vst.msk [vmem:[#allocation2 + $0x58] sm:$0xff] %vm2209_vm3, %v3317_v22  ;;  %v3305_v48 = vld [vmem:[#allocation2 + $0x78] sm:$0xff] }
 0x56a   : > { %v3482_v36 = vadd.f32 %v3470_v53, %v6885_v51  ;;  %3332 = vst.msk [vmem:[#allocation2 + $0x50] sm:$0xff] %vm2209_vm3, %v3316_v49  ;;  %v5678_v41 = vpop.f32.mrb[58].mxu0  ;;  %v5718_v58 = vpop.f32.mrb[72].mxu1 }
 0x56b   : > { %3495 = vst.msk [vmem:[#allocation2 + $0x38] sm:$0xff] %vm2209_vm3, %v3483_v52  ;;  %v3319_v62 = vadd.f32 %v5678_v41, %v3303_v35  ;;  %v3271_v2 = vpop.f32.mrb[59].mxu0  ;;  %v3574_v42 = vpop.f32.mrb[73].mxu1 }
 0x56c   : > { %3494 = vst.msk [vmem:[#allocation2 + $0x30] sm:$0xff] %vm2209_vm3, %v3482_v36  ;;  %v3473_v6 = vld [vmem:[#allocation2 + $0x48] sm:$0xff]  ;;  %v3318_v43 = vadd.f32 %v3302_v23, %v3271_v2 }
 0x56d   : > { %3335 = vst.msk [vmem:[#allocation2 + $0x68] sm:$0xff] %vm2209_vm3, %v3319_v62  ;;  %v3485_v0 = vadd.f32 %v5698_v63, %v3473_v6  ;;  %v3472_v11 = vld [vmem:[#allocation2 + $0x40] sm:$0xff] }
 0x56e   : > { %3334 = vst.msk [vmem:[#allocation2 + $0x60] sm:$0xff] %vm2209_vm3, %v3318_v43  ;;  %v3484_v51 = vadd.f32 %v3472_v11, %v3429_v4  ;;  %v5681_v55 = vpop.f32.mrb[60].mxu0  ;;  %v5721_v8 = vpop.f32.mrb[74].mxu1  ;;  %v3643_v9 = vld [vmem:[#allocation2 + $0x28] sm:$0xff] }
 0x56f   : > { %3497 = vst.msk [vmem:[#allocation2 + $0x48] sm:$0xff] %vm2209_vm3, %v3485_v0  ;;  %v3321_v12 = vadd.f32 %v5681_v55, %v3305_v48  ;;  %v3281_v14 = vpop.f32.mrb[61].mxu0  ;;  %v3584_v1 = vpop.f32.mrb[75].mxu1  ;;  %v3642_v16 = vld [vmem:[#allocation2 + $0x20] sm:$0xff]  ;;  %v3659_v4 = vmax.f32 %v3643_v9, 0.0 }
 0x570   : > { %3496 = vst.msk [vmem:[#allocation2 + $0x40] sm:$0xff] %vm2209_vm3, %v3484_v51  ;;  %v3475_v18 = vld [vmem:[#allocation2 + $0x58] sm:$0xff]  ;;  %v3320_v20 = vadd.f32 %v3304_v7, %v3281_v14  ;;  %v3658_v27 = vmax.f32 %v3642_v16, 0.0 }
 0x571   : > { %3337 = vst.msk [vmem:[#allocation2 + $0x78] sm:$0xff] %vm2209_vm3, %v3321_v12  ;;  %v3487_v63 = vadd.f32 %v6894_v3, %v3475_v18  ;;  %v3474_v29 = vld [vmem:[#allocation2 + $0x50] sm:$0xff] }
 0x572   : > { %3336 = vst.msk [vmem:[#allocation2 + $0x70] sm:$0xff] %vm2209_vm3, %v3320_v20  ;;  %v3486_v31 = vadd.f32 %v3474_v29, %v6896_v10  ;;  %v5724_v33 = vpop.f32.mrb[76].mxu1  ;;  %5742 = vmatprep.mubr.msk.f32.mxu0 %vm2209_vm3, %v3658_v27  ;;  %v3645_v13 = vld [vmem:[#allocation2 + $0x38] sm:$0xff] }
 0x573   : > { %3499 = vst.msk [vmem:[#allocation2 + $0x58] sm:$0xff] %vm2209_vm3, %v3487_v63  ;;  %v3594_v37 = vpop.f32.mrb[77].mxu1  ;;  %5743 = vmatmul.mubr.msk.f32.gmra.mrb[66].mxu0 %vm2209_vm3, %v3659_v4  ;;  %v3644_v17 = vld [vmem:[#allocation2 + $0x30] sm:$0xff]  ;;  %v3661_v24 = vmax.f32 %v3645_v13, 0.0 }
 0x574   : > { %3498 = vst.msk [vmem:[#allocation2 + $0x50] sm:$0xff] %vm2209_vm3, %v3486_v31  ;;  %v3477_v39 = vld [vmem:[#allocation2 + $0x68] sm:$0xff]  ;;  %v3660_v3 = vmax.f32 %v3644_v17, 0.0  ;;  %v4051_v17 = vpop.permute.xlu0 %4050 }
 0x575   : > { %v3489_v22 = vadd.f32 %v6900_v5, %v3477_v39  ;;  %v3476_v30 = vld [vmem:[#allocation2 + $0x60] sm:$0xff] }
 0x576   : > { %v3615_v49 = vld [vmem:[#allocation2 + $0x48] sm:$0xff]  ;;  %v3488_v10 = vadd.f32 %v3476_v30, %v6902_v25  ;;  %v5727_v35 = vpop.f32.mrb[78].mxu1  ;;  %5745 = vmatprep.mubr.msk.f32.mxu0 %vm2209_vm3, %v3660_v3 }
 0x577   : > { %v3623_v52 = vadd.f32 %v5718_v58, %v3615_v49  ;;  %v3614_v53 = vld [vmem:[#allocation2 + $0x40] sm:$0xff]  ;;  %3501 = vst.msk [vmem:[#allocation2 + $0x68] sm:$0xff] %vm2209_vm3, %v3489_v22  ;;  %v3604_v23 = vpop.f32.mrb[79].mxu1  ;;  %5746 = vmatmul.mubr.msk.f32.gmra.mrb[68].mxu0 %vm2209_vm3, %v3661_v24 }
 0x578   : > { %v3622_v36 = vadd.f32 %v3614_v53, %v3574_v42  ;;  %3500 = vst.msk [vmem:[#allocation2 + $0x60] sm:$0xff] %vm2209_vm3, %v3488_v10  ;;  %v3479_v41 = vld [vmem:[#allocation2 + $0x78] sm:$0xff] }
 0x579   : > { %3631 = vst.msk [vmem:[#allocation2 + $0x48] sm:$0xff] %vm2209_vm3, %v3623_v52  ;;  %v3491_v5 = vadd.f32 %v6908_v45, %v3479_v41  ;;  %v3478_v62 = vld [vmem:[#allocation2 + $0x70] sm:$0xff] }
 0x57a   : > { %3630 = vst.msk [vmem:[#allocation2 + $0x40] sm:$0xff] %vm2209_vm3, %v3622_v36  ;;  %v3617_v25 = vld [vmem:[#allocation2 + $0x58] sm:$0xff]  ;;  %v3490_v58 = vadd.f32 %v3478_v62, %v6911_v47 }
 0x57b   : > { %v3625_v2 = vadd.f32 %v5721_v8, %v3617_v25  ;;  %v3616_v6 = vld [vmem:[#allocation2 + $0x50] sm:$0xff]  ;;  %3503 = vst.msk [vmem:[#allocation2 + $0x78] sm:$0xff] %vm2209_vm3, %v3491_v5 }
 0x57c   : > { %v3624_v43 = vadd.f32 %v3616_v6, %v3584_v1  ;;  %3502 = vst.msk [vmem:[#allocation2 + $0x70] sm:$0xff] %vm2209_vm3, %v3490_v58 }
 0x57d   : > { %3633 = vst.msk [vmem:[#allocation2 + $0x58] sm:$0xff] %vm2209_vm3, %v3625_v2 }
 0x57e   : > { %3632 = vst.msk [vmem:[#allocation2 + $0x50] sm:$0xff] %vm2209_vm3, %v3624_v43  ;;  %v3619_v42 = vld [vmem:[#allocation2 + $0x68] sm:$0xff] }
 0x57f   : > { %v3627_v48 = vadd.f32 %v5724_v33, %v3619_v42  ;;  %v3618_v45 = vld [vmem:[#allocation2 + $0x60] sm:$0xff] }
 0x580   : > { %v3626_v0 = vadd.f32 %v3618_v45, %v3594_v37  ;;  %v3647_v11 = vld [vmem:[#allocation2 + $0x48] sm:$0xff] }
 0x581   : > { %3635 = vst.msk [vmem:[#allocation2 + $0x68] sm:$0xff] %vm2209_vm3, %v3627_v48  ;;  %v3646_v7 = vld [vmem:[#allocation2 + $0x40] sm:$0xff]  ;;  %v3663_v9 = vmax.f32 %v3647_v11, 0.0 }
 0x582   : > { %3634 = vst.msk [vmem:[#allocation2 + $0x60] sm:$0xff] %vm2209_vm3, %v3626_v0  ;;  %v3621_v47 = vld [vmem:[#allocation2 + $0x78] sm:$0xff]  ;;  %v3662_v51 = vmax.f32 %v3646_v7, 0.0 }
 0x583   : > { %v3629_v55 = vadd.f32 %v5727_v35, %v3621_v47  ;;  %v3620_v8 = vld [vmem:[#allocation2 + $0x70] sm:$0xff] }
 0x584   : > { %v3628_v12 = vadd.f32 %v3620_v8, %v3604_v23  ;;  %5748 = vmatprep.mubr.msk.f32.mxu0 %vm2209_vm3, %v3662_v51  ;;  %v3649_v14 = vld [vmem:[#allocation2 + $0x58] sm:$0xff] }
 0x585   : > { %3637 = vst.msk [vmem:[#allocation2 + $0x78] sm:$0xff] %vm2209_vm3, %v3629_v55  ;;  %5749 = vmatmul.mubr.msk.f32.gmra.mrb[70].mxu0 %vm2209_vm3, %v3663_v9  ;;  %v3648_v1 = vld [vmem:[#allocation2 + $0x50] sm:$0xff]  ;;  %v3665_v18 = vmax.f32 %v3649_v14, 0.0 }
 0x586   : > { %3636 = vst.msk [vmem:[#allocation2 + $0x70] sm:$0xff] %vm2209_vm3, %v3628_v12  ;;  %v3664_v16 = vmax.f32 %v3648_v1, 0.0 }
 0x588   : > { %5751 = vmatprep.mubr.msk.f32.mxu0 %vm2209_vm3, %v3664_v16  ;;  %v3651_v20 = vld [vmem:[#allocation2 + $0x68] sm:$0xff] }
 0x589   : > { %5752 = vmatmul.mubr.msk.f32.gmra.mrb[72].mxu0 %vm2209_vm3, %v3665_v18  ;;  %v3650_v27 = vld [vmem:[#allocation2 + $0x60] sm:$0xff]  ;;  %v3667_v29 = vmax.f32 %v3651_v20, 0.0 }
 0x58a   : > { %v3666_v63 = vmax.f32 %v3650_v27, 0.0 }
 0x58c   : > { %5754 = vmatprep.mubr.msk.f32.mxu0 %vm2209_vm3, %v3666_v63  ;;  %v3653_v4 = vld [vmem:[#allocation2 + $0x78] sm:$0xff] }
 0x58d   : > { %5755 = vmatmul.mubr.msk.f32.gmra.mrb[74].mxu0 %vm2209_vm3, %v3667_v29  ;;  %v3652_v31 = vld [vmem:[#allocation2 + $0x70] sm:$0xff]  ;;  %v3669_v13 = vmax.f32 %v3653_v4, 0.0 }
 0x58e   : > { %v3668_v33 = vmax.f32 %v3652_v31, 0.0 }
 0x590   : > { %5757 = vmatprep.mubr.msk.f32.mxu0 %vm2209_vm3, %v3668_v33 }
 0x591   : > { %5758 = vmatmul.mubr.msk.f32.gmra.mrb[76].mxu0 %vm2209_vm3, %v3669_v13 }
 0x592   : > { %5768 = vmatprep.mubr.msk.f32.mxu0 %vm2209_vm3, %v6495_v19  ;;  %v4111_v19 = vld [vmem:[%s7266_s15] sm:$0xff] }
 0x595   : > { %5769 = vmatmul.mubr.msk.f32.vlgmr.msra.gmra.mrb[62].mxu0 %vm2209_vm3, %v6497_v21  ;;  %v4112_v21 = vld [vmem:[%s7266_s15 + $0x8] sm:$0xff] }
 0x596   : > { %5771 = vmatprep.mubr.msk.f32.mxu0 %vm2209_vm3, %v6509_v26  ;;  %v6038_v26 = vpack.c.bf16 %v4112_v21, %v4111_v19 }
 0x598   : > { %6039 = vmatprep.subr.bf16.mxu1 %v6038_v26 }
 0x599   : > { %5772 = vmatmul.mubr.msk.f32.gmra.mrb[64].mxu0 %vm2209_vm3, %v6511_v28  ;;  %6041 = vmatpush3.bf16.msra.mxu1 %v6038_v26  ;;  %v4113_v28 = vld [vmem:[%s7266_s15 + $0x10] sm:$0xff] }
 0x59a   : > { %5774 = vmatprep.mubr.msk.f32.mxu0 %vm2209_vm3, %v6523_v32  ;;  %v4114_v32 = vld [vmem:[%s7266_s15 + $0x18] sm:$0xff] }
 0x59d   : > { %5775 = vmatmul.mubr.msk.f32.gmra.mrb[66].mxu0 %vm2209_vm3, %v6525_v34  ;;  %v6042_v34 = vpack.c.bf16 %v4114_v32, %v4113_v28 }
 0x59e   : > { %5777 = vmatprep.mubr.msk.f32.mxu0 %vm2209_vm3, %v6537_v38  ;;  %v4115_v38 = vld [vmem:[%s7266_s15 + $0x20] sm:$0xff] }
 0x59f   : > { %6043 = vmatprep.subr.bf16.mxu1 %v6042_v34 }
 0x5a0   : > { %6045 = vmatpush3.bf16.msra.mxu1 %v6042_v34 }
 0x5a1   : > { %5778 = vmatmul.mubr.msk.f32.gmra.mrb[68].mxu0 %vm2209_vm3, %v6539_v40  ;;  %v4116_v40 = vld [vmem:[%s7266_s15 + $0x28] sm:$0xff] }
 0x5a2   : > { %5780 = vmatprep.mubr.msk.f32.mxu0 %vm2209_vm3, %v6551_v44  ;;  %v6046_v44 = vpack.c.bf16 %v4116_v40, %v4115_v38 }
 0x5a4   : > { %6047 = vmatprep.subr.bf16.mxu1 %v6046_v44 }
 0x5a5   : > { %5781 = vmatmul.mubr.msk.f32.gmra.mrb[70].mxu0 %vm2209_vm3, %v6553_v46  ;;  %6049 = vmatpush3.bf16.msra.mxu1 %v6046_v44  ;;  %v4117_v46 = vld [vmem:[%s7266_s15 + $0x30] sm:$0xff] }
 0x5a6   : > { %5783 = vmatprep.mubr.msk.f32.mxu0 %vm2209_vm3, %v6565_v15  ;;  %v4118_v15 = vld [vmem:[%s7266_s15 + $0x38] sm:$0xff]  ;;  %v4212_v44 = vld [vmem:[%s7268_s17 + $0x10] sm:$0xff] }
 0x5a9   : > { %5784 = vmatmul.mubr.msk.f32.gmra.mrb[72].mxu0 %vm2209_vm3, %v6567_v50  ;;  %v6050_v50 = vpack.c.bf16 %v4118_v15, %v4117_v46  ;;  %v4213_v46 = vld [vmem:[%s7268_s17 + $0x18] sm:$0xff] }
 0x5aa   : > { %5786 = vmatprep.mubr.msk.f32.mxu0 %vm2209_vm3, %v6579_v54  ;;  %v4210_v54 = vld [vmem:[%s7268_s17] sm:$0xff]  ;;  %v6058_v15 = vpack.c.bf16 %v4213_v46, %v4212_v44 }
 0x5ab   : > { %6051 = vmatprep.subr.bf16.mxu1 %v6050_v50 }
 0x5ac   : > { %6053 = vmatpush3.bf16.msra.mxu1 %v6050_v50  ;;  %v4304_v50 = vld [vmem:[%s7270_s19] sm:$0xff] }
 0x5ad   : > { %5787 = vmatmul.mubr.msk.f32.gmra.mrb[74].mxu0 %vm2209_vm3, %v6581_v56  ;;  %v4211_v56 = vld [vmem:[%s7268_s17 + $0x8] sm:$0xff] }
 0x5ae   : > { %5789 = vmatprep.mubr.msk.f32.mxu0 %vm2209_vm3, %v2417_v60  ;;  %v6054_v57 = vpack.c.bf16 %v4211_v56, %v4210_v54  ;;  %v7024_v60 = vpop.permute.xlu1 %4071  ;;  %v4305_v54 = vld [vmem:[%s7270_s19 + $0x8] sm:$0xff] }
 0x5af   : > { %v6062_v56 = vpack.c.bf16 %v4305_v54, %v4304_v50  ;;  %v5047_v50 = vld [vmem:[%s7271_s20] ss:$0 sm:$0xff] }
 0x5b0   : > { %6055 = vmatprep.subr.bf16.mxu1 %v6054_v57 }
 0x5b1   : > { %5790 = vmatmul.mubr.msk.f32.gmra.mrb[76].mxu0 %vm2209_vm3, %v2418_v61  ;;  %v5040_v61 = vld [vmem:[%s7263_s12] ss:$0 sm:$0xff] }
 0x5b2   : > { %v4077_v30 = vpop.permute.xlu1 %4076 }
 0x668   : > { %v5770_v37 = vpop.f32.mrb[62].mxu0 }
 0x669   : > { %v4024_v39 = vadd.f32 %v5770_v37, %v5040_v61  ;;  %v3937_v3 = vpop.f32.mrb[63].mxu0 }
 0x66a   : > { %v7029_v22 = vadd.f32 %v5040_v61, %v3937_v3 }
 0x66b   : > { %v4054_v24 = vmul.f32 %v4051_v17, %v4024_v39 }
 0x66c   : > { %v5773_v49 = vpop.f32.mrb[64].mxu0 }
 0x66d   : > { %v4026_v10 = vadd.f32 %v5773_v49, %v5040_v61  ;;  %v3947_v35 = vpop.f32.mrb[65].mxu0  ;;  %v7031_v52 = vadd.f32 %v4077_v30, %v4054_v24  ;;  %v4306_v24 = vld [vmem:[%s7270_s19 + $0x10] sm:$0xff]  ;;  %v4307_v49 = vld [vmem:[%s7270_s19 + $0x18] sm:$0xff] }
 0x66e   : > { %v7033_v53 = vadd.f32 %v5040_v61, %v3947_v35  ;;  %v6066_v35 = vpack.c.bf16 %v4307_v49, %v4306_v24 }
 0x66f   : > { %v4056_v23 = vmul.f32 %v4051_v17, %v4026_v10 }
 0x670   : > { %v5776_v36 = vpop.f32.mrb[66].mxu0 }
 0x671   : > { %v7035_v41 = vadd.f32 %v4077_v30, %v4056_v23  ;;  %v4028_v5 = vadd.f32 %v5776_v36, %v5040_v61  ;;  %v3957_v62 = vpop.f32.mrb[67].mxu0  ;;  %v4308_v36 = vld [vmem:[%s7270_s19 + $0x20] sm:$0xff] }
 0x672   : > { %v7037_v25 = vadd.f32 %v5040_v61, %v3957_v62 }
 0x673   : > { %v4058_v58 = vmul.f32 %v4051_v17, %v4028_v5  ;;  %v4309_v5 = vld [vmem:[%s7270_s19 + $0x28] sm:$0xff] }
 0x674   : > { %v5779_v2 = vpop.f32.mrb[68].mxu0  ;;  %v6070_v62 = vpack.c.bf16 %v4309_v5, %v4308_v36 }
 0x675   : > { %v7039_v6 = vadd.f32 %v4077_v30, %v4058_v58  ;;  %v4030_v43 = vadd.f32 %v5779_v2, %v5040_v61  ;;  %v3967_v42 = vpop.f32.mrb[69].mxu0  ;;  %v4310_v58 = vld [vmem:[%s7270_s19 + $0x30] sm:$0xff]  ;;  %v4311_v2 = vld [vmem:[%s7270_s19 + $0x38] sm:$0xff] }
 0x676   : > { %v7041_v48 = vadd.f32 %v5040_v61, %v3967_v42  ;;  %v4055_v42 = vmul.f32 %v7022_v59, %v7033_v53  ;;  %v4098_v53 = vmax.f32 %v7035_v41, 0.0 }
 0x677   : > { %v4060_v45 = vmul.f32 %v4051_v17, %v4030_v43  ;;  %v6074_v43 = vpack.c.bf16 %v4311_v2, %v4310_v58 }
 0x678   : > { %v5782_v0 = vpop.f32.mrb[70].mxu0 }
 0x679   : > { %v7043_v11 = vadd.f32 %v4077_v30, %v4060_v45  ;;  %v4032_v7 = vadd.f32 %v5782_v0, %v5040_v61  ;;  %v3977_v47 = vpop.f32.mrb[71].mxu0  ;;  %v4081_v45 = vadd.f32 %v7024_v60, %v4055_v42  ;;  %v4057_v0 = vmul.f32 %v7022_v59, %v7037_v25 }
 0x67a   : > { %v7045_v51 = vadd.f32 %v5040_v61, %v3977_v47 }
 0x67b   : > { %v4062_v55 = vmul.f32 %v4051_v17, %v4032_v7  ;;  %v4096_v7 = vmax.f32 %v7031_v52, 0.0  ;;  %v4097_v47 = vmax.f32 %v4081_v45, 0.0  ;;  %v4100_v52 = vmax.f32 %v7039_v6, 0.0 }
 0x67c   : > { %v5785_v8 = vpop.f32.mrb[72].mxu0  ;;  %v4061_v25 = vmul.f32 %v7022_v59, %v7045_v51  ;;  %v4102_v41 = vmax.f32 %v7043_v11, 0.0 }
 0x67d   : > { %v7047_v9 = vadd.f32 %v4077_v30, %v4062_v55  ;;  %v4034_v12 = vadd.f32 %v5785_v8, %v5040_v61  ;;  %v3987_v14 = vpop.f32.mrb[73].mxu0  ;;  %v4083_v55 = vadd.f32 %v7024_v60, %v4057_v0  ;;  %v4059_v8 = vmul.f32 %v7022_v59, %v7041_v48 }
 0x67e   : > { %v7049_v1 = vadd.f32 %v5040_v61, %v3987_v14  ;;  %v4087_v48 = vadd.f32 %v7024_v60, %v4061_v25 }
 0x67f   : > { %v4064_v16 = vmul.f32 %v4051_v17, %v4034_v12  ;;  %v4099_v12 = vmax.f32 %v4083_v55, 0.0  ;;  %v4085_v14 = vadd.f32 %v7024_v60, %v4059_v8  ;;  %v4104_v6 = vmax.f32 %v7047_v9, 0.0  ;;  %v4523_v9 = vld [vmem:[%s7272_s21 + $0x8] sm:$0xff] }
 0x680   : > { %v5788_v18 = vpop.f32.mrb[74].mxu0 }
 0x681   : > { %v7051_v20 = vadd.f32 %v4077_v30, %v4064_v16  ;;  %v4036_v27 = vadd.f32 %v5788_v18, %v5040_v61  ;;  %v3997_v63 = vpop.f32.mrb[75].mxu0  ;;  %v4101_v16 = vmax.f32 %v4085_v14, 0.0  ;;  %v4063_v18 = vmul.f32 %v7022_v59, %v7049_v1 }
 0x682   : > { %v7053_v29 = vadd.f32 %v5040_v61, %v3997_v63 }
 0x683   : > { %v4066_v4 = vmul.f32 %v4051_v17, %v4036_v27  ;;  %v4103_v27 = vmax.f32 %v4087_v48, 0.0  ;;  %v4089_v51 = vadd.f32 %v7024_v60, %v4063_v18  ;;  %v4106_v11 = vmax.f32 %v7051_v20, 0.0  ;;  %v4524_v20 = vld [vmem:[%s7272_s21 + $0x10] sm:$0xff] }
 0x684   : > { %v5791_v31 = vpop.f32.mrb[76].mxu0  ;;  %v4065_v63 = vmul.f32 %v7022_v59, %v7053_v29 }
 0x685   : > { %v7055_v33 = vadd.f32 %v4077_v30, %v4066_v4  ;;  %v4038_v13 = vadd.f32 %v5791_v31, %v5040_v61  ;;  %v4007_v19 = vpop.f32.mrb[77].mxu0  ;;  %v4105_v4 = vmax.f32 %v4089_v51, 0.0 }
 0x686   : > { %v4037_v21 = vadd.f32 %v5040_v61, %v4007_v19  ;;  %v5041_v61 = vld [vmem:[%s7267_s16] ss:$0 sm:$0xff]  ;;  %v4091_v1 = vadd.f32 %v7024_v60, %v4065_v63 }
 0x687   : > { %v4068_v26 = vmul.f32 %v4051_v17, %v4038_v13  ;;  %v4526_v19 = vld [vmem:[%s7272_s21 + $0x20] sm:$0xff] }
 0x688   : > { %v4067_v28 = vmul.f32 %v7022_v59, %v4037_v21  ;;  %v4107_v31 = vmax.f32 %v4091_v1, 0.0  ;;  %v4527_v21 = vld [vmem:[%s7272_s21 + $0x28] sm:$0xff] }
 0x689   : > { %v7058_v32 = vadd.f32 %v4077_v30, %v4068_v26  ;;  %v6086_v26 = vpack.c.bf16 %v4527_v21, %v4526_v19 }
 0x68a   : > { %v7061_v34 = vadd.f32 %v7024_v60, %v4067_v28  ;;  %v4528_v28 = vld [vmem:[%s7272_s21 + $0x30] sm:$0xff] }
 0x68b   : > { %v4110_v40 = vmax.f32 %v7058_v32, 0.0  ;;  %v4529_v32 = vld [vmem:[%s7272_s21 + $0x38] sm:$0xff] }
 0x68c   : > { %v4109_v38 = vmax.f32 %v7061_v34, 0.0  ;;  %v6090_v34 = vpack.c.bf16 %v4529_v32, %v4528_v28 }
 0x68e   : > { %5808 = vmatprep.mubr.msk.f32.mxu1 %vm4126_vm4, %v4109_v38 }
 0x68f   : > { %5809 = vmatmul.mubr.msk.f32.vlgmr.msra.gmra.mrb[80].mxu1 %vm4126_vm4, %v4110_v40 }
 0x690   : > { %6057 = vmatpush3.bf16.msra.mxu1 %v6054_v57  ;;  %v4053_v57 = vmul.f32 %v7022_v59, %v7029_v22  ;;  %v4108_v59 = vmax.f32 %v7055_v33, 0.0  ;;  %v4525_v33 = vld [vmem:[%s7272_s21 + $0x18] sm:$0xff] }
 0x691   : > { %6059 = vmatprep.subr.bf16.mxu1 %v6058_v15  ;;  %v6082_v13 = vpack.c.bf16 %v4525_v33, %v4524_v20  ;;  %v5064_v20 = vld [vmem:[%s7273_s22] ss:$0 sm:$0xff] }
 0x692   : > { %v4079_v3 = vadd.f32 %v7024_v60, %v4053_v57  ;;  %v4522_v60 = vld [vmem:[%s7272_s21] sm:$0xff] }
 0x693   : > { %v6078_v29 = vpack.c.bf16 %v4523_v9, %v4522_v60 }
 0x694   : > { %6061 = vmatpush3.bf16.msra.mxu1 %v6058_v15  ;;  %v4095_v23 = vmax.f32 %v4079_v3, 0.0 }
 0x695   : > { %6063 = vmatprep.subr.bf16.mxu1 %v6062_v56  ;;  %6079 = vmatprep.subr.bf16.mxu0 %v6078_v29 }
 0x696   : > { %6081 = vmatpush3.bf16.msra.mxu0 %v6078_v29 }
 0x697   : > { %6083 = vmatprep.subr.bf16.mxu0 %v6082_v13 }
 0x69a   : > { %6085 = vmatpush3.bf16.msra.mxu0 %v6082_v13 }
 0x69b   : > { %6087 = vmatprep.subr.bf16.mxu0 %v6086_v26 }
 0x69e   : > { %6089 = vmatpush3.bf16.msra.mxu0 %v6086_v26 }
 0x69f   : > { %6091 = vmatprep.subr.bf16.mxu0 %v6090_v34 }
 0x6a2   : > { %6093 = vmatpush3.bf16.msra.mxu0 %v6090_v34 }
 0x762   : > { %v5810_v37 = vpop.f32.mrb[80].mxu1 }
 0x763   : > { %v4205_v17 = vadd.f32 %v5810_v37, %v5041_v61  ;;  %v4199_v39 = vpop.f32.mrb[81].mxu1 }
 0x764   : > { %v4200_v30 = vadd.f32 %v5041_v61, %v4199_v39 }
 0x765   : > { %v4209_v22 = vmax.f32 %v4205_v17, 0.0 }
 0x766   : > { %v4208_v10 = vmax.f32 %v4200_v30, 0.0 }
 0x768   : > { %5819 = vmatprep.mubr.msk.f32.mxu1 %vm2209_vm3, %v4208_v10 }
 0x769   : > { %5820 = vmatmul.mubr.msk.f32.vlgmr.msra.gmra.mrb[82].mxu1 %vm2209_vm3, %v4209_v22 }
 0x76a   : > { %6065 = vmatpush3.bf16.msra.mxu1 %v6062_v56  ;;  %5838 = vmatprep.mubr.msk.f32.mxu1 %vm4126_vm4, %v4095_v23 }
 0x76b   : > { %6067 = vmatprep.subr.bf16.mxu1 %v6066_v35 }
 0x76e   : > { %6069 = vmatpush3.bf16.msra.mxu1 %v6066_v35 }
 0x76f   : > { %6071 = vmatprep.subr.bf16.mxu1 %v6070_v62 }
 0x772   : > { %6073 = vmatpush3.bf16.msra.mxu1 %v6070_v62 }
 0x773   : > { %6075 = vmatprep.subr.bf16.mxu1 %v6074_v43 }
 0x776   : > { %6077 = vmatpush3.bf16.msra.mxu1 %v6074_v43 }
 0x779   : > { %5839 = vmatmul.mubr.msk.f32.vlgmr.msra.gmra.mrb[84].mxu1 %vm4126_vm4, %v4096_v7 }
 0x77a   : > { %5841 = vmatprep.mubr.msk.f32.mxu1 %vm4126_vm4, %v4097_v47 }
 0x77d   : > { %5842 = vmatmul.mubr.msk.f32.gmra.mrb[86].mxu1 %vm4126_vm4, %v4098_v53 }
 0x77e   : > { %5844 = vmatprep.mubr.msk.f32.mxu1 %vm4126_vm4, %v4099_v12 }
 0x781   : > { %5845 = vmatmul.mubr.msk.f32.gmra.mrb[88].mxu1 %vm4126_vm4, %v4100_v52 }
 0x782   : > { %5847 = vmatprep.mubr.msk.f32.mxu1 %vm4126_vm4, %v4101_v16 }
 0x785   : > { %5848 = vmatmul.mubr.msk.f32.gmra.mrb[90].mxu1 %vm4126_vm4, %v4102_v41 }
 0x786   : > { %5850 = vmatprep.mubr.msk.f32.mxu1 %vm4126_vm4, %v4103_v27 }
 0x789   : > { %5851 = vmatmul.mubr.msk.f32.gmra.mrb[92].mxu1 %vm4126_vm4, %v4104_v6 }
 0x78a   : > { %5853 = vmatprep.mubr.msk.f32.mxu1 %vm4126_vm4, %v4105_v4 }
 0x78d   : > { %5854 = vmatmul.mubr.msk.f32.gmra.mrb[94].mxu1 %vm4126_vm4, %v4106_v11 }
 0x78e   : > { %5856 = vmatprep.mubr.msk.f32.mxu1 %vm4126_vm4, %v4107_v31 }
 0x791   : > { %5857 = vmatmul.mubr.msk.f32.gmra.mrb[96].mxu1 %vm4126_vm4, %v4108_v59 }
 0x792   : > { %5859 = vmatprep.mubr.msk.f32.mxu1 %vm4126_vm4, %v4109_v38  ;;  %v5044_v38 = vld [vmem:[%s7269_s18] ss:$0 sm:$0xff] }
 0x795   : > { %5860 = vmatmul.mubr.msk.f32.gmra.mrb[98].mxu1 %vm4126_vm4, %v4110_v40 }
 0x83c   : > { %v5821_v40 = vpop.f32.mrb[82].mxu1 }
 0x83d   : > { %v4299_v44 = vadd.f32 %v5821_v40, %v5044_v38  ;;  %v4293_v46 = vpop.f32.mrb[83].mxu1 }
 0x83e   : > { %v4294_v15 = vadd.f32 %v5044_v38, %v4293_v46 }
 0x83f   : > { %4303 = vst.msk [vmem:[%s745_s4 + $0x8] sm:$0xff] %vm1384_vm2, %v4299_v44 }
 0x840   : > { %4302 = vst.msk [vmem:[%s745_s4] sm:$0xff] %vm1384_vm2, %v4294_v15 }
 0x84c   : > { %v5840_v54 = vpop.f32.mrb[84].mxu1 }
 0x84d   : > { %v4433_v56 = vadd.f32 %v5840_v54, %v5047_v50  ;;  %v4427_v57 = vpop.f32.mrb[85].mxu1 }
 0x84e   : > { %v4428_v61 = vadd.f32 %v5047_v50, %v4427_v57 }
 0x84f   : > { %v4507_v39 = vmax.f32 %v4433_v56, 0.0 }
 0x850   : > { %v4506_v37 = vmax.f32 %v4428_v61, 0.0  ;;  %v5843_v17 = vpop.f32.mrb[86].mxu1 }
 0x851   : > { %v4443_v3 = vadd.f32 %v5843_v17, %v5047_v50  ;;  %v4437_v30 = vpop.f32.mrb[87].mxu1 }
 0x852   : > { %v4438_v24 = vadd.f32 %v5047_v50, %v4437_v30  ;;  %5878 = vmatprep.mubr.msk.f32.mxu0 %vm4126_vm4, %v4506_v37 }
 0x853   : > { %5879 = vmatmul.mubr.msk.f32.vlgmr.msra.gmra.mrb[78].mxu0 %vm4126_vm4, %v4507_v39  ;;  %v4509_v22 = vmax.f32 %v4443_v3, 0.0 }
 0x854   : > { %v4508_v49 = vmax.f32 %v4438_v24, 0.0  ;;  %v5846_v10 = vpop.f32.mrb[88].mxu1 }
 0x855   : > { %v4453_v35 = vadd.f32 %v5846_v10, %v5047_v50  ;;  %v4447_v23 = vpop.f32.mrb[89].mxu1 }
 0x856   : > { %v4448_v36 = vadd.f32 %v5047_v50, %v4447_v23  ;;  %5881 = vmatprep.mubr.msk.f32.mxu0 %vm4126_vm4, %v4508_v49 }
 0x857   : > { %5882 = vmatmul.mubr.msk.f32.gmra.mrb[80].mxu0 %vm4126_vm4, %v4509_v22  ;;  %v4511_v58 = vmax.f32 %v4453_v35, 0.0 }
 0x858   : > { %v4510_v5 = vmax.f32 %v4448_v36, 0.0  ;;  %v5849_v62 = vpop.f32.mrb[90].mxu1 }
 0x859   : > { %v4463_v2 = vadd.f32 %v5849_v62, %v5047_v50  ;;  %v4457_v43 = vpop.f32.mrb[91].mxu1 }
 0x85a   : > { %v4458_v42 = vadd.f32 %v5047_v50, %v4457_v43  ;;  %5884 = vmatprep.mubr.msk.f32.mxu0 %vm4126_vm4, %v4510_v5 }
 0x85b   : > { %5885 = vmatmul.mubr.msk.f32.gmra.mrb[82].mxu0 %vm4126_vm4, %v4511_v58  ;;  %v4513_v7 = vmax.f32 %v4463_v2, 0.0 }
 0x85c   : > { %v4512_v45 = vmax.f32 %v4458_v42, 0.0  ;;  %v5852_v0 = vpop.f32.mrb[92].mxu1 }
 0x85d   : > { %v4473_v47 = vadd.f32 %v5852_v0, %v5047_v50  ;;  %v4467_v55 = vpop.f32.mrb[93].mxu1 }
 0x85e   : > { %v4468_v8 = vadd.f32 %v5047_v50, %v4467_v55  ;;  %5887 = vmatprep.mubr.msk.f32.mxu0 %vm4126_vm4, %v4512_v45 }
 0x85f   : > { %5888 = vmatmul.mubr.msk.f32.gmra.mrb[84].mxu0 %vm4126_vm4, %v4513_v7  ;;  %v4515_v14 = vmax.f32 %v4473_v47, 0.0 }
 0x860   : > { %v4514_v53 = vmax.f32 %v4468_v8, 0.0  ;;  %v5855_v12 = vpop.f32.mrb[94].mxu1 }
 0x861   : > { %v4483_v25 = vadd.f32 %v5855_v12, %v5047_v50  ;;  %v4477_v52 = vpop.f32.mrb[95].mxu1 }
 0x862   : > { %v4478_v16 = vadd.f32 %v5047_v50, %v4477_v52  ;;  %5890 = vmatprep.mubr.msk.f32.mxu0 %vm4126_vm4, %v4514_v53 }
 0x863   : > { %5891 = vmatmul.mubr.msk.f32.gmra.mrb[86].mxu0 %vm4126_vm4, %v4515_v14  ;;  %v4517_v41 = vmax.f32 %v4483_v25, 0.0 }
 0x864   : > { %v4516_v48 = vmax.f32 %v4478_v16, 0.0  ;;  %v5858_v18 = vpop.f32.mrb[96].mxu1 }
 0x865   : > { %v4493_v27 = vadd.f32 %v5858_v18, %v5047_v50  ;;  %v4487_v51 = vpop.f32.mrb[97].mxu1 }
 0x866   : > { %v4488_v63 = vadd.f32 %v5047_v50, %v4487_v51  ;;  %5893 = vmatprep.mubr.msk.f32.mxu0 %vm4126_vm4, %v4516_v48 }
 0x867   : > { %5894 = vmatmul.mubr.msk.f32.gmra.mrb[88].mxu0 %vm4126_vm4, %v4517_v41  ;;  %v4519_v1 = vmax.f32 %v4493_v27, 0.0 }
 0x868   : > { %v4518_v6 = vmax.f32 %v4488_v63, 0.0  ;;  %v5861_v4 = vpop.f32.mrb[98].mxu1 }
 0x869   : > { %v4503_v11 = vadd.f32 %v5861_v4, %v5047_v50  ;;  %v4497_v31 = vpop.f32.mrb[99].mxu1 }
 0x86a   : > { %v4498_v59 = vadd.f32 %v5047_v50, %v4497_v31  ;;  %5896 = vmatprep.mubr.msk.f32.mxu0 %vm4126_vm4, %v4518_v6 }
 0x86b   : > { %5897 = vmatmul.mubr.msk.f32.gmra.mrb[90].mxu0 %vm4126_vm4, %v4519_v1  ;;  %v4521_v9 = vmax.f32 %v4503_v11, 0.0 }
 0x86c   : > { %v4520_v60 = vmax.f32 %v4498_v59, 0.0 }
 0x86e   : > { %5899 = vmatprep.mubr.msk.f32.mxu0 %vm4126_vm4, %v4520_v60 }
 0x86f   : > { %5900 = vmatmul.mubr.msk.f32.gmra.mrb[92].mxu0 %vm4126_vm4, %v4521_v9 }
 0x926   : > { %v5880_v29 = vpop.f32.mrb[78].mxu0 }
 0x927   : > { %v4657_v33 = vadd.f32 %v5880_v29, %v5064_v20  ;;  %v4651_v13 = vpop.f32.mrb[79].mxu0 }
 0x928   : > { %v4652_v19 = vadd.f32 %v5064_v20, %v4651_v13 }
 0x929   : > { %4731 = vst.msk [vmem:[%s7214_s25 + $0x8] sm:$0xff] %vm1384_vm2, %v4657_v33 }
 0x92a   : > { %4730 = vst.msk [vmem:[%s7214_s25] sm:$0xff] %vm1384_vm2, %v4652_v19  ;;  %v5883_v21 = vpop.f32.mrb[80].mxu0 }
 0x92b   : > { %v4667_v26 = vadd.f32 %v5883_v21, %v5064_v20  ;;  %v4661_v28 = vpop.f32.mrb[81].mxu0 }
 0x92c   : > { %v4662_v32 = vadd.f32 %v5064_v20, %v4661_v28 }
 0x92d   : > { %4733 = vst.msk [vmem:[%s7214_s25 + $0x18] sm:$0xff] %vm1384_vm2, %v4667_v26 }
 0x92e   : > { %4732 = vst.msk [vmem:[%s7214_s25 + $0x10] sm:$0xff] %vm1384_vm2, %v4662_v32  ;;  %v5886_v34 = vpop.f32.mrb[82].mxu0 }
 0x92f   : > { %v4677_v38 = vadd.f32 %v5886_v34, %v5064_v20  ;;  %v4671_v40 = vpop.f32.mrb[83].mxu0 }
 0x930   : > { %v4672_v44 = vadd.f32 %v5064_v20, %v4671_v40 }
 0x931   : > { %4735 = vst.msk [vmem:[%s7214_s25 + $0x28] sm:$0xff] %vm1384_vm2, %v4677_v38 }
 0x932   : > { %4734 = vst.msk [vmem:[%s7214_s25 + $0x20] sm:$0xff] %vm1384_vm2, %v4672_v44  ;;  %v5889_v46 = vpop.f32.mrb[84].mxu0 }
 0x933   : > { %v4687_v15 = vadd.f32 %v5889_v46, %v5064_v20  ;;  %v4681_v50 = vpop.f32.mrb[85].mxu0 }
 0x934   : > { %v4682_v54 = vadd.f32 %v5064_v20, %v4681_v50 }
 0x935   : > { %4737 = vst.msk [vmem:[%s7214_s25 + $0x38] sm:$0xff] %vm1384_vm2, %v4687_v15 }
 0x936   : > { %4736 = vst.msk [vmem:[%s7214_s25 + $0x30] sm:$0xff] %vm1384_vm2, %v4682_v54  ;;  %v5892_v56 = vpop.f32.mrb[86].mxu0 }
 0x937   : > { %v4697_v57 = vadd.f32 %v5892_v56, %v5064_v20  ;;  %v4691_v61 = vpop.f32.mrb[87].mxu0 }
 0x938   : > { %v4692_v37 = vadd.f32 %v5064_v20, %v4691_v61 }
 0x939   : > { %4739 = vst.msk [vmem:[%s7214_s25 + $0x48] sm:$0xff] %vm1384_vm2, %v4697_v57 }
 0x93a   : > { %4738 = vst.msk [vmem:[%s7214_s25 + $0x40] sm:$0xff] %vm1384_vm2, %v4692_v37  ;;  %v5895_v17 = vpop.f32.mrb[88].mxu0 }
 0x93b   : > { %v4707_v39 = vadd.f32 %v5895_v17, %v5064_v20  ;;  %v4701_v3 = vpop.f32.mrb[89].mxu0 }
 0x93c   : > { %v4702_v30 = vadd.f32 %v5064_v20, %v4701_v3 }
 0x93d   : > { %4741 = vst.msk [vmem:[%s7214_s25 + $0x58] sm:$0xff] %vm1384_vm2, %v4707_v39 }
 0x93e   : > { %4740 = vst.msk [vmem:[%s7214_s25 + $0x50] sm:$0xff] %vm1384_vm2, %v4702_v30  ;;  %v5898_v24 = vpop.f32.mrb[90].mxu0 }
 0x93f   : > { %v4717_v49 = vadd.f32 %v5898_v24, %v5064_v20  ;;  %v4711_v10 = vpop.f32.mrb[91].mxu0 }
 0x940   : > { %v4712_v22 = vadd.f32 %v5064_v20, %v4711_v10 }
 0x941   : > { %4743 = vst.msk [vmem:[%s7214_s25 + $0x68] sm:$0xff] %vm1384_vm2, %v4717_v49 }
 0x942   : > { %4742 = vst.msk [vmem:[%s7214_s25 + $0x60] sm:$0xff] %vm1384_vm2, %v4712_v22  ;;  %v5901_v35 = vpop.f32.mrb[92].mxu0 }
 0x943   : > { %v4727_v23 = vadd.f32 %v5901_v35, %v5064_v20  ;;  %v4721_v36 = vpop.f32.mrb[93].mxu0 }
 0x944   : > { %v4722_v5 = vadd.f32 %v5064_v20, %v4721_v36 }
 0x945   : > { %4745 = vst.msk [vmem:[%s7214_s25 + $0x78] sm:$0xff] %vm1384_vm2, %v4727_v23 }
 0x946   : > { %4744 = vst.msk [vmem:[%s7214_s25 + $0x70] sm:$0xff] %vm1384_vm2, %v4722_v5 }
 0x947 PF: > { %s35_s5 = sadd.s32 1, %s6129_s5  }
 0x948   : > { %p32_p4 = scmp.ge.s32.totalorder %s35_s5, 4  }
 0x94a   :  { %34 = sbr.rel (!%p32_p4) target bundleno = 10 (0xa), region = 161 }

</bundles_post_ra>
